<compile_context>
chip_gen: v6e
topology: v6e:2x2x1
jax: 0.10.0
libtpu: 0.0.40
codegen_flags: <defaults>
</compile_context>

<pallas_src>
import numpy as np
import jax
import jax.numpy as jnp
from jax import lax
from jax.experimental import pallas as pl
from jax.experimental.pallas import tpu as pltpu


# -----------------------------------------------------------------------------
# Pallas kernel: whole forward pass (tiny shapes -> gridless, all in VMEM/vregs)
# -----------------------------------------------------------------------------
def traj_encoder_kernel(x_ref,         # [T*Bp, Din]  flat, row = t*Bp + b
                        fcin_wt_ref,   # [Din, K]
                        fcin_b_ref,    # [1, K]
                        wih0_t_ref,    # [K, 4H]      layer-0 W_ih^T
                        w_rec_ref,     # [L*H, L*4H]  diag: W_hh^T, superdiag: W_ih^T(l+1)
                        bias_ref,      # [1, L*4H]    per-layer (b_ih + b_hh)
                        fcout_wt_ref,  # [H, O]
                        fcout_b_ref,   # [1, O]
                        hc_out_ref):   # [2*Bp, O]    rows [0:Bp]=h_out, [Bp:2Bp]=c_out
    TBp = x_ref.shape[0]
    H4 = wih0_t_ref.shape[1]
    H = H4 // 4
    L = w_rec_ref.shape[0] // H
    Bp = hc_out_ref.shape[0] // 2
    T = TBp // Bp
    f32 = jnp.float32

    # ---- fc_in + ReLU over all T*Bp rows, then hoisted layer-0 input gates ---
    seq = jnp.maximum(
        jnp.dot(x_ref[...], fcin_wt_ref[...], preferred_element_type=f32)
        + fcin_b_ref[...], 0.0)                                       # [T*Bp, K]
    gih0 = jnp.dot(seq, wih0_t_ref[...], preferred_element_type=f32)  # [T*Bp, 4H]

    w_rec = w_rec_ref[...]             # hoisted once per call (value)
    bias = bias_ref[...]               # [1, L*4H]

    # g-gate lane mask (lanes [2H, 3H) of one 4H gate block), hoisted once
    # (JAX does not CSE broadcast_in_dim).
    lane = lax.broadcasted_iota(jnp.int32, (Bp, H4), 1)
    g_lane = (lane >= 2 * H) & (lane < 3 * H)

    h = [jnp.zeros((Bp, H), f32) for _ in range(L)]
    c = [jnp.zeros((Bp, H), f32) for _ in range(L)]

    # ---- wavefront recurrence: step s updates layer l at time t = s - l ------
    # TODO(synk): for large T replace the static unroll with lax.fori_loop
    #             (unroll=2..4) and a peeled first step.
    for s in range(T + L - 1):
        if s == 0:
            rec = bias                                    # all h are zero
        else:
            h_all = h[0] if L == 1 else jnp.concatenate(h, axis=-1)   # [Bp, L*H]
            rec = jnp.dot(h_all, w_rec, preferred_element_type=f32) + bias

        for l in range(max(0, s - T + 1), min(L, s + 1)):
            t = s - l
            gl = rec[:, l * H4:(l + 1) * H4]
            if l == 0:
                gl = gl + gih0[t * Bp:(t + 1) * Bp, :]    # aligned 8-row slice
            # Single sigmoid pass; tanh(x) = 2*sigmoid(2x) - 1 on the g lanes.
            pre = jnp.where(g_lane, gl + gl, gl)
            sg = jax.nn.sigmoid(pre)
            act = jnp.where(g_lane, sg + sg - 1.0, sg)
            i_g = act[:, 0:H]
            f_g = act[:, H:2 * H]
            g_g = act[:, 2 * H:3 * H]
            o_g = act[:, 3 * H:4 * H]
            # t == 0: c == 0, so skipping f*c is exact.
            c_new = i_g * g_g if t == 0 else f_g * c[l] + i_g * g_g
            c[l] = c_new
            h[l] = o_g * jnp.tanh(c_new)

    # ---- fused fc_out + ReLU on stacked [h; c] of the last layer -------------
    hc = jnp.concatenate([h[L - 1], c[L - 1]], axis=0)                # [2*Bp, H]
    hc_out_ref[...] = jnp.maximum(
        jnp.dot(hc, fcout_wt_ref[...], preferred_element_type=f32)
        + fcout_b_ref[...], 0.0)


# -----------------------------------------------------------------------------
# Host-side layout plumbing (free): transposes, wavefront block matrix, biases
# -----------------------------------------------------------------------------
def prepare_kernel_params(p):
    L = len(p['wih'])
    H = p['whh'][0].shape[1]
    fcin_wt = jnp.asarray(p['fc_in_w']).T                 # [Din, K]
    fcin_b = jnp.asarray(p['fc_in_b'])[None, :]           # [1, K]
    wih0_t = jnp.asarray(p['wih'][0]).T                   # [K, 4H]
    # Block recurrent matrix: diag W_hh^T, superdiag W_ih^T of the next layer.
    w_rec = np.zeros((L * H, L * 4 * H), np.float32)
    for l in range(L):
        w_rec[l * H:(l + 1) * H, l * 4 * H:(l + 1) * 4 * H] = np.asarray(p['whh'][l]).T
        if l + 1 < L:
            w_rec[l * H:(l + 1) * H, (l + 1) * 4 * H:(l + 2) * 4 * H] = \
                np.asarray(p['wih'][l + 1]).T
    bias = jnp.concatenate([p['bih'][l] + p['bhh'][l] for l in range(L)])[None, :]
    fcout_wt = jnp.asarray(p['fc_out_w']).T               # [H, O]
    fcout_b = jnp.asarray(p['fc_out_b'])[None, :]         # [1, O]
    return (fcin_wt, fcin_b, wih0_t, jnp.asarray(w_rec), bias, fcout_wt, fcout_b)


# -----------------------------------------------------------------------------
# Host wrapper
# -----------------------------------------------------------------------------
def trajectory_encoder(x, kparams):
    fcin_wt, fcin_b, wih0_t, w_rec, bias, fcout_wt, fcout_b = kparams
    T, B, Din = x.shape
    K = fcin_wt.shape[1]
    O = fcout_wt.shape[1]
    assert fcin_wt.shape[0] == Din
    # Module constraint with embeded_encoding=True: the LSTM consumes the fc_in
    # output, so LSTM input_size must equal in_kernel_size.
    assert wih0_t.shape[0] == K, "module requires input_size == in_kernel_size"

    Bp = max(8, ((B + 7) // 8) * 8)             # sublane-align the batch
    x_pad = jnp.zeros((T, Bp, Din), jnp.float32).at[:, :B, :].set(x)
    x_flat = x_pad.reshape(T * Bp, Din)         # wrapper-side layout plumbing

    vmem = pl.BlockSpec(memory_space=pltpu.MemorySpace.VMEM)
    # TODO(synk): on v7x add a "parallel" grid axis over independent
    # trajectories / batch blocks to use the second TensorCore.
    hc = pl.pallas_call(
        traj_encoder_kernel,
        out_shape=jax.ShapeDtypeStruct((2 * Bp, O), jnp.float32),
        in_specs=[vmem] * 8,
        out_specs=vmem,
    )(x_flat, fcin_wt, fcin_b, wih0_t, w_rec, bias, fcout_wt, fcout_b)
    return hc[:B], hc[Bp:Bp + B]


# -----------------------------------------------------------------------------
# Pure-JAX reference (mirrors the PyTorch forward exactly)
# -----------------------------------------------------------------------------
def trajectory_encoder_ref(x, p):
    T, B, _ = x.shape
    L = len(p['wih'])
    H = p['whh'][0].shape[1]
    seq = jax.nn.relu(jnp.einsum('tbd,kd->tbk', x, p['fc_in_w']) + p['fc_in_b'])
    for l in range(L):
        h = jnp.zeros((B, H), jnp.float32)
        c = jnp.zeros((B, H), jnp.float32)
        outs = []
        for t in range(T):
            gates = (seq[t] @ p['wih'][l].T + h @ p['whh'][l].T
                     + p['bih'][l] + p['bhh'][l])
            i_g = jax.nn.sigmoid(gates[:, 0:H])
            f_g = jax.nn.sigmoid(gates[:, H:2 * H])
            g_g = jnp.tanh(gates[:, 2 * H:3 * H])
            o_g = jax.nn.sigmoid(gates[:, 3 * H:4 * H])
            c = f_g * c + i_g * g_g
            h = o_g * jnp.tanh(c)
            outs.append(h)
        seq = jnp.stack(outs)
    h_out = jax.nn.relu(h @ p['fc_out_w'].T + p['fc_out_b'])
    c_out = jax.nn.relu(c @ p['fc_out_w'].T + p['fc_out_b'])
    return h_out, c_out


# -----------------------------------------------------------------------------
# Deterministic parameter construction (PyTorch-style uniform init, torch layout)
# -----------------------------------------------------------------------------
def make_params(key, input_size, hidden_size, num_layers, in_k, out_k):
    ks = jax.random.split(key, 4 + 4 * num_layers)
    u = lambda k, shape, b: jax.random.uniform(k, shape, jnp.float32, -b, b)

    b_in = 1.0 / np.sqrt(input_size)
    p = {'fc_in_w': u(ks[0], (in_k, input_size), b_in),        # torch Linear [out, in]
         'fc_in_b': u(ks[1], (in_k,), b_in)}

    b_h = 1.0 / np.sqrt(hidden_size)
    p['wih'], p['whh'], p['bih'], p['bhh'] = [], [], [], []
    for l in range(num_layers):
        in_dim = input_size if l == 0 else hidden_size         # torch nn.LSTM layout
        p['wih'].append(u(ks[4 + 4 * l + 0], (4 * hidden_size, in_dim), b_h))
        p['whh'].append(u(ks[4 + 4 * l + 1], (4 * hidden_size, hidden_size), b_h))
        p['bih'].append(u(ks[4 + 4 * l + 2], (4 * hidden_size,), b_h))
        p['bhh'].append(u(ks[4 + 4 * l + 3], (4 * hidden_size,), b_h))

    p['fc_out_w'] = u(ks[2], (out_k, hidden_size), b_h)
    p['fc_out_b'] = u(ks[3], (out_k,), b_h)
    return p


if __name__ == "__main__":
    # small shapes consistent with the module's forward
    T, B = 8, 2
    input_size = 32
    in_kernel_size = 32       # must equal input_size (module constraint)
    hidden_size = 32
    out_kernel_size = 32
    num_layers = 2

    key = jax.random.PRNGKey(0)
    k_x, k_p = jax.random.split(key)
    x = jax.random.normal(k_x, (T, B, input_size), jnp.float32)
    params = make_params(k_p, input_size, hidden_size, num_layers,
                         in_kernel_size, out_kernel_size)
    kparams = prepare_kernel_params(params)

    h_out, c_out = trajectory_encoder(x, kparams)
    jax.block_until_ready((h_out, c_out))

    h_ref, c_ref = trajectory_encoder_ref(x, params)
    np.testing.assert_allclose(np.asarray(h_out), np.asarray(h_ref),
                               rtol=1e-5, atol=1e-5)
    np.testing.assert_allclose(np.asarray(c_out), np.asarray(c_ref),
                               rtol=1e-5, atol=1e-5)

    print("KERNEL_OK")
</pallas_src>

<mosaic_0001>
module attributes {stable_mosaic.version = 11 : i64} {
  func.func @traj_encoder_kernel(%arg0: memref<64x32xf32, #tpu.memory_space<vmem>>, %arg1: memref<32x32xf32, #tpu.memory_space<vmem>>, %arg2: memref<1x32xf32, #tpu.memory_space<vmem>>, %arg3: memref<32x128xf32, #tpu.memory_space<vmem>>, %arg4: memref<64x256xf32, #tpu.memory_space<vmem>>, %arg5: memref<1x256xf32, #tpu.memory_space<vmem>>, %arg6: memref<32x32xf32, #tpu.memory_space<vmem>>, %arg7: memref<1x32xf32, #tpu.memory_space<vmem>>, %arg8: memref<16x32xf32, #tpu.memory_space<vmem>>) attributes {dimension_semantics = [], scalar_prefetch = 0 : i64, scratch_operands = 0 : i64, tpu.core_type = #tpu.core_type<tc>} {
    %c0 = arith.constant 0 : index
    %c0_0 = arith.constant 0 : index
    %0 = vector.load %arg0[%c0, %c0_0] : memref<64x32xf32, #tpu.memory_space<vmem>>, vector<64x32xf32>
    %c0_1 = arith.constant 0 : index
    %c0_2 = arith.constant 0 : index
    %1 = vector.load %arg1[%c0_1, %c0_2] : memref<32x32xf32, #tpu.memory_space<vmem>>, vector<32x32xf32>
    %cst = arith.constant dense<0.000000e+00> : vector<64x32xf32>
    %2 = tpu.matmul %0, %1, %cst {dimension_numbers = #tpu.dot_dimension_numbers<[1], [0], [0], [1], [0, 0, 1, 1], [], []>} : vector<64x32xf32>, vector<32x32xf32>, vector<64x32xf32> -> vector<64x32xf32>
    %c0_3 = arith.constant 0 : index
    %c0_4 = arith.constant 0 : index
    %3 = vector.load %arg2[%c0_3, %c0_4] : memref<1x32xf32, #tpu.memory_space<vmem>>, vector<1x32xf32>
    %4 = vector.broadcast %3 : vector<1x32xf32> to vector<64x32xf32>
    %5 = arith.addf %2, %4 : vector<64x32xf32>
    %cst_5 = arith.constant 0.000000e+00 : f32
    %6 = vector.broadcast %cst_5 : f32 to vector<64x32xf32>
    %7 = arith.maximumf %5, %6 : vector<64x32xf32>
    %c0_6 = arith.constant 0 : index
    %c0_7 = arith.constant 0 : index
    %8 = vector.load %arg3[%c0_6, %c0_7] : memref<32x128xf32, #tpu.memory_space<vmem>>, vector<32x128xf32>
    %cst_8 = arith.constant dense<0.000000e+00> : vector<64x128xf32>
    %9 = tpu.matmul %7, %8, %cst_8 {dimension_numbers = #tpu.dot_dimension_numbers<[1], [0], [0], [1], [0, 0, 1, 1], [], []>} : vector<64x32xf32>, vector<32x128xf32>, vector<64x128xf32> -> vector<64x128xf32>
    %c0_9 = arith.constant 0 : index
    %c0_10 = arith.constant 0 : index
    %10 = vector.load %arg4[%c0_9, %c0_10] : memref<64x256xf32, #tpu.memory_space<vmem>>, vector<64x256xf32>
    %c0_11 = arith.constant 0 : index
    %c0_12 = arith.constant 0 : index
    %11 = vector.load %arg5[%c0_11, %c0_12] : memref<1x256xf32, #tpu.memory_space<vmem>>, vector<1x256xf32>
    %12 = tpu.iota {dimensions = array<i32: 1>} : vector<8x128xi32>
    %c64_i32 = arith.constant 64 : i32
    %13 = vector.broadcast %c64_i32 : i32 to vector<8x128xi32>
    %14 = arith.cmpi sge, %12, %13 : vector<8x128xi32>
    %c96_i32 = arith.constant 96 : i32
    %15 = vector.broadcast %c96_i32 : i32 to vector<8x128xi32>
    %16 = arith.cmpi slt, %12, %15 : vector<8x128xi32>
    %17 = arith.andi %14, %16 : vector<8x128xi1>
    %cst_13 = arith.constant 0.000000e+00 : f32
    %18 = vector.broadcast %cst_13 : f32 to vector<8x32xf32>
    %19 = vector.extract_strided_slice %11 {offsets = [0, 0], sizes = [1, 128], strides = [1, 1]} : vector<1x256xf32> to vector<1x128xf32>
    %20 = vector.extract_strided_slice %9 {offsets = [0, 0], sizes = [8, 128], strides = [1, 1]} : vector<64x128xf32> to vector<8x128xf32>
    %21 = vector.broadcast %19 : vector<1x128xf32> to vector<8x128xf32>
    %22 = arith.addf %21, %20 : vector<8x128xf32>
    %23 = arith.addf %22, %22 : vector<8x128xf32>
    %24 = arith.select %17, %23, %22 : vector<8x128xi1>, vector<8x128xf32>
    %25 = arith.negf %24 : vector<8x128xf32>
    %26 = math.exp %25 : vector<8x128xf32>
    %cst_14 = arith.constant 1.000000e+00 : f32
    %27 = vector.broadcast %cst_14 : f32 to vector<8x128xf32>
    %28 = arith.addf %27, %26 : vector<8x128xf32>
    %29 = arith.divf %27, %28 : vector<8x128xf32>
    %30 = arith.addf %29, %29 : vector<8x128xf32>
    %cst_15 = arith.constant 1.000000e+00 : f32
    %31 = vector.broadcast %cst_15 : f32 to vector<8x128xf32>
    %32 = arith.subf %30, %31 : vector<8x128xf32>
    %33 = arith.select %17, %32, %29 : vector<8x128xi1>, vector<8x128xf32>
    %34 = vector.extract_strided_slice %33 {offsets = [0, 0], sizes = [8, 32], strides = [1, 1]} : vector<8x128xf32> to vector<8x32xf32>
    %35 = vector.extract_strided_slice %33 {offsets = [0, 64], sizes = [8, 32], strides = [1, 1]} : vector<8x128xf32> to vector<8x32xf32>
    %36 = vector.extract_strided_slice %33 {offsets = [0, 96], sizes = [8, 32], strides = [1, 1]} : vector<8x128xf32> to vector<8x32xf32>
    %37 = arith.mulf %34, %35 : vector<8x32xf32>
    %38 = math.tanh %37 : vector<8x32xf32>
    %39 = arith.mulf %36, %38 : vector<8x32xf32>
    %40 = tpu.concatenate %39, %18 in 1 : vector<8x32xf32>, vector<8x32xf32> -> vector<8x64xf32>
    %cst_16 = arith.constant dense<0.000000e+00> : vector<8x256xf32>
    %41 = tpu.matmul %40, %10, %cst_16 {dimension_numbers = #tpu.dot_dimension_numbers<[1], [0], [0], [1], [0, 0, 1, 1], [], []>} : vector<8x64xf32>, vector<64x256xf32>, vector<8x256xf32> -> vector<8x256xf32>
    %42 = vector.broadcast %11 : vector<1x256xf32> to vector<8x256xf32>
    %43 = arith.addf %41, %42 : vector<8x256xf32>
    %44 = vector.extract_strided_slice %43 {offsets = [0, 0], sizes = [8, 128], strides = [1, 1]} : vector<8x256xf32> to vector<8x128xf32>
    %45 = vector.extract_strided_slice %9 {offsets = [8, 0], sizes = [8, 128], strides = [1, 1]} : vector<64x128xf32> to vector<8x128xf32>
    %46 = arith.addf %44, %45 : vector<8x128xf32>
    %47 = arith.addf %46, %46 : vector<8x128xf32>
    %48 = arith.select %17, %47, %46 : vector<8x128xi1>, vector<8x128xf32>
    %49 = arith.negf %48 : vector<8x128xf32>
    %50 = math.exp %49 : vector<8x128xf32>
    %cst_17 = arith.constant 1.000000e+00 : f32
    %51 = vector.broadcast %cst_17 : f32 to vector<8x128xf32>
    %52 = arith.addf %51, %50 : vector<8x128xf32>
    %53 = arith.divf %51, %52 : vector<8x128xf32>
    %54 = arith.addf %53, %53 : vector<8x128xf32>
    %cst_18 = arith.constant 1.000000e+00 : f32
    %55 = vector.broadcast %cst_18 : f32 to vector<8x128xf32>
    %56 = arith.subf %54, %55 : vector<8x128xf32>
    %57 = arith.select %17, %56, %53 : vector<8x128xi1>, vector<8x128xf32>
    %58 = vector.extract_strided_slice %57 {offsets = [0, 0], sizes = [8, 32], strides = [1, 1]} : vector<8x128xf32> to vector<8x32xf32>
    %59 = vector.extract_strided_slice %57 {offsets = [0, 32], sizes = [8, 32], strides = [1, 1]} : vector<8x128xf32> to vector<8x32xf32>
    %60 = vector.extract_strided_slice %57 {offsets = [0, 64], sizes = [8, 32], strides = [1, 1]} : vector<8x128xf32> to vector<8x32xf32>
    %61 = vector.extract_strided_slice %57 {offsets = [0, 96], sizes = [8, 32], strides = [1, 1]} : vector<8x128xf32> to vector<8x32xf32>
    %62 = arith.mulf %59, %37 : vector<8x32xf32>
    %63 = arith.mulf %58, %60 : vector<8x32xf32>
    %64 = arith.addf %62, %63 : vector<8x32xf32>
    %65 = math.tanh %64 : vector<8x32xf32>
    %66 = arith.mulf %61, %65 : vector<8x32xf32>
    %67 = vector.extract_strided_slice %43 {offsets = [0, 128], sizes = [8, 128], strides = [1, 1]} : vector<8x256xf32> to vector<8x128xf32>
    %68 = arith.addf %67, %67 : vector<8x128xf32>
    %69 = arith.select %17, %68, %67 : vector<8x128xi1>, vector<8x128xf32>
    %70 = arith.negf %69 : vector<8x128xf32>
    %71 = math.exp %70 : vector<8x128xf32>
    %cst_19 = arith.constant 1.000000e+00 : f32
    %72 = vector.broadcast %cst_19 : f32 to vector<8x128xf32>
    %73 = arith.addf %72, %71 : vector<8x128xf32>
    %74 = arith.divf %72, %73 : vector<8x128xf32>
    %75 = arith.addf %74, %74 : vector<8x128xf32>
    %cst_20 = arith.constant 1.000000e+00 : f32
    %76 = vector.broadcast %cst_20 : f32 to vector<8x128xf32>
    %77 = arith.subf %75, %76 : vector<8x128xf32>
    %78 = arith.select %17, %77, %74 : vector<8x128xi1>, vector<8x128xf32>
    %79 = vector.extract_strided_slice %78 {offsets = [0, 0], sizes = [8, 32], strides = [1, 1]} : vector<8x128xf32> to vector<8x32xf32>
    %80 = vector.extract_strided_slice %78 {offsets = [0, 64], sizes = [8, 32], strides = [1, 1]} : vector<8x128xf32> to vector<8x32xf32>
    %81 = vector.extract_strided_slice %78 {offsets = [0, 96], sizes = [8, 32], strides = [1, 1]} : vector<8x128xf32> to vector<8x32xf32>
    %82 = arith.mulf %79, %80 : vector<8x32xf32>
    %83 = math.tanh %82 : vector<8x32xf32>
    %84 = arith.mulf %81, %83 : vector<8x32xf32>
    %85 = tpu.concatenate %66, %84 in 1 : vector<8x32xf32>, vector<8x32xf32> -> vector<8x64xf32>
    %cst_21 = arith.constant dense<0.000000e+00> : vector<8x256xf32>
    %86 = tpu.matmul %85, %10, %cst_21 {dimension_numbers = #tpu.dot_dimension_numbers<[1], [0], [0], [1], [0, 0, 1, 1], [], []>} : vector<8x64xf32>, vector<64x256xf32>, vector<8x256xf32> -> vector<8x256xf32>
    %87 = vector.broadcast %11 : vector<1x256xf32> to vector<8x256xf32>
    %88 = arith.addf %86, %87 : vector<8x256xf32>
    %89 = vector.extract_strided_slice %88 {offsets = [0, 0], sizes = [8, 128], strides = [1, 1]} : vector<8x256xf32> to vector<8x128xf32>
    %90 = vector.extract_strided_slice %9 {offsets = [16, 0], sizes = [8, 128], strides = [1, 1]} : vector<64x128xf32> to vector<8x128xf32>
    %91 = arith.addf %89, %90 : vector<8x128xf32>
    %92 = arith.addf %91, %91 : vector<8x128xf32>
    %93 = arith.select %17, %92, %91 : vector<8x128xi1>, vector<8x128xf32>
    %94 = arith.negf %93 : vector<8x128xf32>
    %95 = math.exp %94 : vector<8x128xf32>
    %cst_22 = arith.constant 1.000000e+00 : f32
    %96 = vector.broadcast %cst_22 : f32 to vector<8x128xf32>
    %97 = arith.addf %96, %95 : vector<8x128xf32>
    %98 = arith.divf %96, %97 : vector<8x128xf32>
    %99 = arith.addf %98, %98 : vector<8x128xf32>
    %cst_23 = arith.constant 1.000000e+00 : f32
    %100 = vector.broadcast %cst_23 : f32 to vector<8x128xf32>
    %101 = arith.subf %99, %100 : vector<8x128xf32>
    %102 = arith.select %17, %101, %98 : vector<8x128xi1>, vector<8x128xf32>
    %103 = vector.extract_strided_slice %102 {offsets = [0, 0], sizes = [8, 32], strides = [1, 1]} : vector<8x128xf32> to vector<8x32xf32>
    %104 = vector.extract_strided_slice %102 {offsets = [0, 32], sizes = [8, 32], strides = [1, 1]} : vector<8x128xf32> to vector<8x32xf32>
    %105 = vector.extract_strided_slice %102 {offsets = [0, 64], sizes = [8, 32], strides = [1, 1]} : vector<8x128xf32> to vector<8x32xf32>
    %106 = vector.extract_strided_slice %102 {offsets = [0, 96], sizes = [8, 32], strides = [1, 1]} : vector<8x128xf32> to vector<8x32xf32>
    %107 = arith.mulf %104, %64 : vector<8x32xf32>
    %108 = arith.mulf %103, %105 : vector<8x32xf32>
    %109 = arith.addf %107, %108 : vector<8x32xf32>
    %110 = math.tanh %109 : vector<8x32xf32>
    %111 = arith.mulf %106, %110 : vector<8x32xf32>
    %112 = vector.extract_strided_slice %88 {offsets = [0, 128], sizes = [8, 128], strides = [1, 1]} : vector<8x256xf32> to vector<8x128xf32>
    %113 = arith.addf %112, %112 : vector<8x128xf32>
    %114 = arith.select %17, %113, %112 : vector<8x128xi1>, vector<8x128xf32>
    %115 = arith.negf %114 : vector<8x128xf32>
    %116 = math.exp %115 : vector<8x128xf32>
    %cst_24 = arith.constant 1.000000e+00 : f32
    %117 = vector.broadcast %cst_24 : f32 to vector<8x128xf32>
    %118 = arith.addf %117, %116 : vector<8x128xf32>
    %119 = arith.divf %117, %118 : vector<8x128xf32>
    %120 = arith.addf %119, %119 : vector<8x128xf32>
    %cst_25 = arith.constant 1.000000e+00 : f32
    %121 = vector.broadcast %cst_25 : f32 to vector<8x128xf32>
    %122 = arith.subf %120, %121 : vector<8x128xf32>
    %123 = arith.select %17, %122, %119 : vector<8x128xi1>, vector<8x128xf32>
    %124 = vector.extract_strided_slice %123 {offsets = [0, 0], sizes = [8, 32], strides = [1, 1]} : vector<8x128xf32> to vector<8x32xf32>
    %125 = vector.extract_strided_slice %123 {offsets = [0, 32], sizes = [8, 32], strides = [1, 1]} : vector<8x128xf32> to vector<8x32xf32>
    %126 = vector.extract_strided_slice %123 {offsets = [0, 64], sizes = [8, 32], strides = [1, 1]} : vector<8x128xf32> to vector<8x32xf32>
    %127 = vector.extract_strided_slice %123 {offsets = [0, 96], sizes = [8, 32], strides = [1, 1]} : vector<8x128xf32> to vector<8x32xf32>
    %128 = arith.mulf %125, %82 : vector<8x32xf32>
    %129 = arith.mulf %124, %126 : vector<8x32xf32>
    %130 = arith.addf %128, %129 : vector<8x32xf32>
    %131 = math.tanh %130 : vector<8x32xf32>
    %132 = arith.mulf %127, %131 : vector<8x32xf32>
    %133 = tpu.concatenate %111, %132 in 1 : vector<8x32xf32>, vector<8x32xf32> -> vector<8x64xf32>
    %cst_26 = arith.constant dense<0.000000e+00> : vector<8x256xf32>
    %134 = tpu.matmul %133, %10, %cst_26 {dimension_numbers = #tpu.dot_dimension_numbers<[1], [0], [0], [1], [0, 0, 1, 1], [], []>} : vector<8x64xf32>, vector<64x256xf32>, vector<8x256xf32> -> vector<8x256xf32>
    %135 = vector.broadcast %11 : vector<1x256xf32> to vector<8x256xf32>
    %136 = arith.addf %134, %135 : vector<8x256xf32>
    %137 = vector.extract_strided_slice %136 {offsets = [0, 0], sizes = [8, 128], strides = [1, 1]} : vector<8x256xf32> to vector<8x128xf32>
    %138 = vector.extract_strided_slice %9 {offsets = [24, 0], sizes = [8, 128], strides = [1, 1]} : vector<64x128xf32> to vector<8x128xf32>
    %139 = arith.addf %137, %138 : vector<8x128xf32>
    %140 = arith.addf %139, %139 : vector<8x128xf32>
    %141 = arith.select %17, %140, %139 : vector<8x128xi1>, vector<8x128xf32>
    %142 = arith.negf %141 : vector<8x128xf32>
    %143 = math.exp %142 : vector<8x128xf32>
    %cst_27 = arith.constant 1.000000e+00 : f32
    %144 = vector.broadcast %cst_27 : f32 to vector<8x128xf32>
    %145 = arith.addf %144, %143 : vector<8x128xf32>
    %146 = arith.divf %144, %145 : vector<8x128xf32>
    %147 = arith.addf %146, %146 : vector<8x128xf32>
    %cst_28 = arith.constant 1.000000e+00 : f32
    %148 = vector.broadcast %cst_28 : f32 to vector<8x128xf32>
    %149 = arith.subf %147, %148 : vector<8x128xf32>
    %150 = arith.select %17, %149, %146 : vector<8x128xi1>, vector<8x128xf32>
    %151 = vector.extract_strided_slice %150 {offsets = [0, 0], sizes = [8, 32], strides = [1, 1]} : vector<8x128xf32> to vector<8x32xf32>
    %152 = vector.extract_strided_slice %150 {offsets = [0, 32], sizes = [8, 32], strides = [1, 1]} : vector<8x128xf32> to vector<8x32xf32>
    %153 = vector.extract_strided_slice %150 {offsets = [0, 64], sizes = [8, 32], strides = [1, 1]} : vector<8x128xf32> to vector<8x32xf32>
    %154 = vector.extract_strided_slice %150 {offsets = [0, 96], sizes = [8, 32], strides = [1, 1]} : vector<8x128xf32> to vector<8x32xf32>
    %155 = arith.mulf %152, %109 : vector<8x32xf32>
    %156 = arith.mulf %151, %153 : vector<8x32xf32>
    %157 = arith.addf %155, %156 : vector<8x32xf32>
    %158 = math.tanh %157 : vector<8x32xf32>
    %159 = arith.mulf %154, %158 : vector<8x32xf32>
    %160 = vector.extract_strided_slice %136 {offsets = [0, 128], sizes = [8, 128], strides = [1, 1]} : vector<8x256xf32> to vector<8x128xf32>
    %161 = arith.addf %160, %160 : vector<8x128xf32>
    %162 = arith.select %17, %161, %160 : vector<8x128xi1>, vector<8x128xf32>
    %163 = arith.negf %162 : vector<8x128xf32>
    %164 = math.exp %163 : vector<8x128xf32>
    %cst_29 = arith.constant 1.000000e+00 : f32
    %165 = vector.broadcast %cst_29 : f32 to vector<8x128xf32>
    %166 = arith.addf %165, %164 : vector<8x128xf32>
    %167 = arith.divf %165, %166 : vector<8x128xf32>
    %168 = arith.addf %167, %167 : vector<8x128xf32>
    %cst_30 = arith.constant 1.000000e+00 : f32
    %169 = vector.broadcast %cst_30 : f32 to vector<8x128xf32>
    %170 = arith.subf %168, %169 : vector<8x128xf32>
    %171 = arith.select %17, %170, %167 : vector<8x128xi1>, vector<8x128xf32>
    %172 = vector.extract_strided_slice %171 {offsets = [0, 0], sizes = [8, 32], strides = [1, 1]} : vector<8x128xf32> to vector<8x32xf32>
    %173 = vector.extract_strided_slice %171 {offsets = [0, 32], sizes = [8, 32], strides = [1, 1]} : vector<8x128xf32> to vector<8x32xf32>
    %174 = vector.extract_strided_slice %171 {offsets = [0, 64], sizes = [8, 32], strides = [1, 1]} : vector<8x128xf32> to vector<8x32xf32>
    %175 = vector.extract_strided_slice %171 {offsets = [0, 96], sizes = [8, 32], strides = [1, 1]} : vector<8x128xf32> to vector<8x32xf32>
    %176 = arith.mulf %173, %130 : vector<8x32xf32>
    %177 = arith.mulf %172, %174 : vector<8x32xf32>
    %178 = arith.addf %176, %177 : vector<8x32xf32>
    %179 = math.tanh %178 : vector<8x32xf32>
    %180 = arith.mulf %175, %179 : vector<8x32xf32>
    %181 = tpu.concatenate %159, %180 in 1 : vector<8x32xf32>, vector<8x32xf32> -> vector<8x64xf32>
    %cst_31 = arith.constant dense<0.000000e+00> : vector<8x256xf32>
    %182 = tpu.matmul %181, %10, %cst_31 {dimension_numbers = #tpu.dot_dimension_numbers<[1], [0], [0], [1], [0, 0, 1, 1], [], []>} : vector<8x64xf32>, vector<64x256xf32>, vector<8x256xf32> -> vector<8x256xf32>
    %183 = vector.broadcast %11 : vector<1x256xf32> to vector<8x256xf32>
    %184 = arith.addf %182, %183 : vector<8x256xf32>
    %185 = vector.extract_strided_slice %184 {offsets = [0, 0], sizes = [8, 128], strides = [1, 1]} : vector<8x256xf32> to vector<8x128xf32>
    %186 = vector.extract_strided_slice %9 {offsets = [32, 0], sizes = [8, 128], strides = [1, 1]} : vector<64x128xf32> to vector<8x128xf32>
    %187 = arith.addf %185, %186 : vector<8x128xf32>
    %188 = arith.addf %187, %187 : vector<8x128xf32>
    %189 = arith.select %17, %188, %187 : vector<8x128xi1>, vector<8x128xf32>
    %190 = arith.negf %189 : vector<8x128xf32>
    %191 = math.exp %190 : vector<8x128xf32>
    %cst_32 = arith.constant 1.000000e+00 : f32
    %192 = vector.broadcast %cst_32 : f32 to vector<8x128xf32>
    %193 = arith.addf %192, %191 : vector<8x128xf32>
    %194 = arith.divf %192, %193 : vector<8x128xf32>
    %195 = arith.addf %194, %194 : vector<8x128xf32>
    %cst_33 = arith.constant 1.000000e+00 : f32
    %196 = vector.broadcast %cst_33 : f32 to vector<8x128xf32>
    %197 = arith.subf %195, %196 : vector<8x128xf32>
    %198 = arith.select %17, %197, %194 : vector<8x128xi1>, vector<8x128xf32>
    %199 = vector.extract_strided_slice %198 {offsets = [0, 0], sizes = [8, 32], strides = [1, 1]} : vector<8x128xf32> to vector<8x32xf32>
    %200 = vector.extract_strided_slice %198 {offsets = [0, 32], sizes = [8, 32], strides = [1, 1]} : vector<8x128xf32> to vector<8x32xf32>
    %201 = vector.extract_strided_slice %198 {offsets = [0, 64], sizes = [8, 32], strides = [1, 1]} : vector<8x128xf32> to vector<8x32xf32>
    %202 = vector.extract_strided_slice %198 {offsets = [0, 96], sizes = [8, 32], strides = [1, 1]} : vector<8x128xf32> to vector<8x32xf32>
    %203 = arith.mulf %200, %157 : vector<8x32xf32>
    %204 = arith.mulf %199, %201 : vector<8x32xf32>
    %205 = arith.addf %203, %204 : vector<8x32xf32>
    %206 = math.tanh %205 : vector<8x32xf32>
    %207 = arith.mulf %202, %206 : vector<8x32xf32>
    %208 = vector.extract_strided_slice %184 {offsets = [0, 128], sizes = [8, 128], strides = [1, 1]} : vector<8x256xf32> to vector<8x128xf32>
    %209 = arith.addf %208, %208 : vector<8x128xf32>
    %210 = arith.select %17, %209, %208 : vector<8x128xi1>, vector<8x128xf32>
    %211 = arith.negf %210 : vector<8x128xf32>
    %212 = math.exp %211 : vector<8x128xf32>
    %cst_34 = arith.constant 1.000000e+00 : f32
    %213 = vector.broadcast %cst_34 : f32 to vector<8x128xf32>
    %214 = arith.addf %213, %212 : vector<8x128xf32>
    %215 = arith.divf %213, %214 : vector<8x128xf32>
    %216 = arith.addf %215, %215 : vector<8x128xf32>
    %cst_35 = arith.constant 1.000000e+00 : f32
    %217 = vector.broadcast %cst_35 : f32 to vector<8x128xf32>
    %218 = arith.subf %216, %217 : vector<8x128xf32>
    %219 = arith.select %17, %218, %215 : vector<8x128xi1>, vector<8x128xf32>
    %220 = vector.extract_strided_slice %219 {offsets = [0, 0], sizes = [8, 32], strides = [1, 1]} : vector<8x128xf32> to vector<8x32xf32>
    %221 = vector.extract_strided_slice %219 {offsets = [0, 32], sizes = [8, 32], strides = [1, 1]} : vector<8x128xf32> to vector<8x32xf32>
    %222 = vector.extract_strided_slice %219 {offsets = [0, 64], sizes = [8, 32], strides = [1, 1]} : vector<8x128xf32> to vector<8x32xf32>
    %223 = vector.extract_strided_slice %219 {offsets = [0, 96], sizes = [8, 32], strides = [1, 1]} : vector<8x128xf32> to vector<8x32xf32>
    %224 = arith.mulf %221, %178 : vector<8x32xf32>
    %225 = arith.mulf %220, %222 : vector<8x32xf32>
    %226 = arith.addf %224, %225 : vector<8x32xf32>
    %227 = math.tanh %226 : vector<8x32xf32>
    %228 = arith.mulf %223, %227 : vector<8x32xf32>
    %229 = tpu.concatenate %207, %228 in 1 : vector<8x32xf32>, vector<8x32xf32> -> vector<8x64xf32>
    %cst_36 = arith.constant dense<0.000000e+00> : vector<8x256xf32>
    %230 = tpu.matmul %229, %10, %cst_36 {dimension_numbers = #tpu.dot_dimension_numbers<[1], [0], [0], [1], [0, 0, 1, 1], [], []>} : vector<8x64xf32>, vector<64x256xf32>, vector<8x256xf32> -> vector<8x256xf32>
    %231 = vector.broadcast %11 : vector<1x256xf32> to vector<8x256xf32>
    %232 = arith.addf %230, %231 : vector<8x256xf32>
    %233 = vector.extract_strided_slice %232 {offsets = [0, 0], sizes = [8, 128], strides = [1, 1]} : vector<8x256xf32> to vector<8x128xf32>
    %234 = vector.extract_strided_slice %9 {offsets = [40, 0], sizes = [8, 128], strides = [1, 1]} : vector<64x128xf32> to vector<8x128xf32>
    %235 = arith.addf %233, %234 : vector<8x128xf32>
    %236 = arith.addf %235, %235 : vector<8x128xf32>
    %237 = arith.select %17, %236, %235 : vector<8x128xi1>, vector<8x128xf32>
    %238 = arith.negf %237 : vector<8x128xf32>
    %239 = math.exp %238 : vector<8x128xf32>
    %cst_37 = arith.constant 1.000000e+00 : f32
    %240 = vector.broadcast %cst_37 : f32 to vector<8x128xf32>
    %241 = arith.addf %240, %239 : vector<8x128xf32>
    %242 = arith.divf %240, %241 : vector<8x128xf32>
    %243 = arith.addf %242, %242 : vector<8x128xf32>
    %cst_38 = arith.constant 1.000000e+00 : f32
    %244 = vector.broadcast %cst_38 : f32 to vector<8x128xf32>
    %245 = arith.subf %243, %244 : vector<8x128xf32>
    %246 = arith.select %17, %245, %242 : vector<8x128xi1>, vector<8x128xf32>
    %247 = vector.extract_strided_slice %246 {offsets = [0, 0], sizes = [8, 32], strides = [1, 1]} : vector<8x128xf32> to vector<8x32xf32>
    %248 = vector.extract_strided_slice %246 {offsets = [0, 32], sizes = [8, 32], strides = [1, 1]} : vector<8x128xf32> to vector<8x32xf32>
    %249 = vector.extract_strided_slice %246 {offsets = [0, 64], sizes = [8, 32], strides = [1, 1]} : vector<8x128xf32> to vector<8x32xf32>
    %250 = vector.extract_strided_slice %246 {offsets = [0, 96], sizes = [8, 32], strides = [1, 1]} : vector<8x128xf32> to vector<8x32xf32>
    %251 = arith.mulf %248, %205 : vector<8x32xf32>
    %252 = arith.mulf %247, %249 : vector<8x32xf32>
    %253 = arith.addf %251, %252 : vector<8x32xf32>
    %254 = math.tanh %253 : vector<8x32xf32>
    %255 = arith.mulf %250, %254 : vector<8x32xf32>
    %256 = vector.extract_strided_slice %232 {offsets = [0, 128], sizes = [8, 128], strides = [1, 1]} : vector<8x256xf32> to vector<8x128xf32>
    %257 = arith.addf %256, %256 : vector<8x128xf32>
    %258 = arith.select %17, %257, %256 : vector<8x128xi1>, vector<8x128xf32>
    %259 = arith.negf %258 : vector<8x128xf32>
    %260 = math.exp %259 : vector<8x128xf32>
    %cst_39 = arith.constant 1.000000e+00 : f32
    %261 = vector.broadcast %cst_39 : f32 to vector<8x128xf32>
    %262 = arith.addf %261, %260 : vector<8x128xf32>
    %263 = arith.divf %261, %262 : vector<8x128xf32>
    %264 = arith.addf %263, %263 : vector<8x128xf32>
    %cst_40 = arith.constant 1.000000e+00 : f32
    %265 = vector.broadcast %cst_40 : f32 to vector<8x128xf32>
    %266 = arith.subf %264, %265 : vector<8x128xf32>
    %267 = arith.select %17, %266, %263 : vector<8x128xi1>, vector<8x128xf32>
    %268 = vector.extract_strided_slice %267 {offsets = [0, 0], sizes = [8, 32], strides = [1, 1]} : vector<8x128xf32> to vector<8x32xf32>
    %269 = vector.extract_strided_slice %267 {offsets = [0, 32], sizes = [8, 32], strides = [1, 1]} : vector<8x128xf32> to vector<8x32xf32>
    %270 = vector.extract_strided_slice %267 {offsets = [0, 64], sizes = [8, 32], strides = [1, 1]} : vector<8x128xf32> to vector<8x32xf32>
    %271 = vector.extract_strided_slice %267 {offsets = [0, 96], sizes = [8, 32], strides = [1, 1]} : vector<8x128xf32> to vector<8x32xf32>
    %272 = arith.mulf %269, %226 : vector<8x32xf32>
    %273 = arith.mulf %268, %270 : vector<8x32xf32>
    %274 = arith.addf %272, %273 : vector<8x32xf32>
    %275 = math.tanh %274 : vector<8x32xf32>
    %276 = arith.mulf %271, %275 : vector<8x32xf32>
    %277 = tpu.concatenate %255, %276 in 1 : vector<8x32xf32>, vector<8x32xf32> -> vector<8x64xf32>
    %cst_41 = arith.constant dense<0.000000e+00> : vector<8x256xf32>
    %278 = tpu.matmul %277, %10, %cst_41 {dimension_numbers = #tpu.dot_dimension_numbers<[1], [0], [0], [1], [0, 0, 1, 1], [], []>} : vector<8x64xf32>, vector<64x256xf32>, vector<8x256xf32> -> vector<8x256xf32>
    %279 = vector.broadcast %11 : vector<1x256xf32> to vector<8x256xf32>
    %280 = arith.addf %278, %279 : vector<8x256xf32>
    %281 = vector.extract_strided_slice %280 {offsets = [0, 0], sizes = [8, 128], strides = [1, 1]} : vector<8x256xf32> to vector<8x128xf32>
    %282 = vector.extract_strided_slice %9 {offsets = [48, 0], sizes = [8, 128], strides = [1, 1]} : vector<64x128xf32> to vector<8x128xf32>
    %283 = arith.addf %281, %282 : vector<8x128xf32>
    %284 = arith.addf %283, %283 : vector<8x128xf32>
    %285 = arith.select %17, %284, %283 : vector<8x128xi1>, vector<8x128xf32>
    %286 = arith.negf %285 : vector<8x128xf32>
    %287 = math.exp %286 : vector<8x128xf32>
    %cst_42 = arith.constant 1.000000e+00 : f32
    %288 = vector.broadcast %cst_42 : f32 to vector<8x128xf32>
    %289 = arith.addf %288, %287 : vector<8x128xf32>
    %290 = arith.divf %288, %289 : vector<8x128xf32>
    %291 = arith.addf %290, %290 : vector<8x128xf32>
    %cst_43 = arith.constant 1.000000e+00 : f32
    %292 = vector.broadcast %cst_43 : f32 to vector<8x128xf32>
    %293 = arith.subf %291, %292 : vector<8x128xf32>
    %294 = arith.select %17, %293, %290 : vector<8x128xi1>, vector<8x128xf32>
    %295 = vector.extract_strided_slice %294 {offsets = [0, 0], sizes = [8, 32], strides = [1, 1]} : vector<8x128xf32> to vector<8x32xf32>
    %296 = vector.extract_strided_slice %294 {offsets = [0, 32], sizes = [8, 32], strides = [1, 1]} : vector<8x128xf32> to vector<8x32xf32>
    %297 = vector.extract_strided_slice %294 {offsets = [0, 64], sizes = [8, 32], strides = [1, 1]} : vector<8x128xf32> to vector<8x32xf32>
    %298 = vector.extract_strided_slice %294 {offsets = [0, 96], sizes = [8, 32], strides = [1, 1]} : vector<8x128xf32> to vector<8x32xf32>
    %299 = arith.mulf %296, %253 : vector<8x32xf32>
    %300 = arith.mulf %295, %297 : vector<8x32xf32>
    %301 = arith.addf %299, %300 : vector<8x32xf32>
    %302 = math.tanh %301 : vector<8x32xf32>
    %303 = arith.mulf %298, %302 : vector<8x32xf32>
    %304 = vector.extract_strided_slice %280 {offsets = [0, 128], sizes = [8, 128], strides = [1, 1]} : vector<8x256xf32> to vector<8x128xf32>
    %305 = arith.addf %304, %304 : vector<8x128xf32>
    %306 = arith.select %17, %305, %304 : vector<8x128xi1>, vector<8x128xf32>
    %307 = arith.negf %306 : vector<8x128xf32>
    %308 = math.exp %307 : vector<8x128xf32>
    %cst_44 = arith.constant 1.000000e+00 : f32
    %309 = vector.broadcast %cst_44 : f32 to vector<8x128xf32>
    %310 = arith.addf %309, %308 : vector<8x128xf32>
    %311 = arith.divf %309, %310 : vector<8x128xf32>
    %312 = arith.addf %311, %311 : vector<8x128xf32>
    %cst_45 = arith.constant 1.000000e+00 : f32
    %313 = vector.broadcast %cst_45 : f32 to vector<8x128xf32>
    %314 = arith.subf %312, %313 : vector<8x128xf32>
    %315 = arith.select %17, %314, %311 : vector<8x128xi1>, vector<8x128xf32>
    %316 = vector.extract_strided_slice %315 {offsets = [0, 0], sizes = [8, 32], strides = [1, 1]} : vector<8x128xf32> to vector<8x32xf32>
    %317 = vector.extract_strided_slice %315 {offsets = [0, 32], sizes = [8, 32], strides = [1, 1]} : vector<8x128xf32> to vector<8x32xf32>
    %318 = vector.extract_strided_slice %315 {offsets = [0, 64], sizes = [8, 32], strides = [1, 1]} : vector<8x128xf32> to vector<8x32xf32>
    %319 = vector.extract_strided_slice %315 {offsets = [0, 96], sizes = [8, 32], strides = [1, 1]} : vector<8x128xf32> to vector<8x32xf32>
    %320 = arith.mulf %317, %274 : vector<8x32xf32>
    %321 = arith.mulf %316, %318 : vector<8x32xf32>
    %322 = arith.addf %320, %321 : vector<8x32xf32>
    %323 = math.tanh %322 : vector<8x32xf32>
    %324 = arith.mulf %319, %323 : vector<8x32xf32>
    %325 = tpu.concatenate %303, %324 in 1 : vector<8x32xf32>, vector<8x32xf32> -> vector<8x64xf32>
    %cst_46 = arith.constant dense<0.000000e+00> : vector<8x256xf32>
    %326 = tpu.matmul %325, %10, %cst_46 {dimension_numbers = #tpu.dot_dimension_numbers<[1], [0], [0], [1], [0, 0, 1, 1], [], []>} : vector<8x64xf32>, vector<64x256xf32>, vector<8x256xf32> -> vector<8x256xf32>
    %327 = vector.broadcast %11 : vector<1x256xf32> to vector<8x256xf32>
    %328 = arith.addf %326, %327 : vector<8x256xf32>
    %329 = vector.extract_strided_slice %328 {offsets = [0, 0], sizes = [8, 128], strides = [1, 1]} : vector<8x256xf32> to vector<8x128xf32>
    %330 = vector.extract_strided_slice %9 {offsets = [56, 0], sizes = [8, 128], strides = [1, 1]} : vector<64x128xf32> to vector<8x128xf32>
    %331 = arith.addf %329, %330 : vector<8x128xf32>
    %332 = arith.addf %331, %331 : vector<8x128xf32>
    %333 = arith.select %17, %332, %331 : vector<8x128xi1>, vector<8x128xf32>
    %334 = arith.negf %333 : vector<8x128xf32>
    %335 = math.exp %334 : vector<8x128xf32>
    %cst_47 = arith.constant 1.000000e+00 : f32
    %336 = vector.broadcast %cst_47 : f32 to vector<8x128xf32>
    %337 = arith.addf %336, %335 : vector<8x128xf32>
    %338 = arith.divf %336, %337 : vector<8x128xf32>
    %339 = arith.addf %338, %338 : vector<8x128xf32>
    %cst_48 = arith.constant 1.000000e+00 : f32
    %340 = vector.broadcast %cst_48 : f32 to vector<8x128xf32>
    %341 = arith.subf %339, %340 : vector<8x128xf32>
    %342 = arith.select %17, %341, %338 : vector<8x128xi1>, vector<8x128xf32>
    %343 = vector.extract_strided_slice %342 {offsets = [0, 0], sizes = [8, 32], strides = [1, 1]} : vector<8x128xf32> to vector<8x32xf32>
    %344 = vector.extract_strided_slice %342 {offsets = [0, 32], sizes = [8, 32], strides = [1, 1]} : vector<8x128xf32> to vector<8x32xf32>
    %345 = vector.extract_strided_slice %342 {offsets = [0, 64], sizes = [8, 32], strides = [1, 1]} : vector<8x128xf32> to vector<8x32xf32>
    %346 = vector.extract_strided_slice %342 {offsets = [0, 96], sizes = [8, 32], strides = [1, 1]} : vector<8x128xf32> to vector<8x32xf32>
    %347 = arith.mulf %344, %301 : vector<8x32xf32>
    %348 = arith.mulf %343, %345 : vector<8x32xf32>
    %349 = arith.addf %347, %348 : vector<8x32xf32>
    %350 = math.tanh %349 : vector<8x32xf32>
    %351 = arith.mulf %346, %350 : vector<8x32xf32>
    %352 = vector.extract_strided_slice %328 {offsets = [0, 128], sizes = [8, 128], strides = [1, 1]} : vector<8x256xf32> to vector<8x128xf32>
    %353 = arith.addf %352, %352 : vector<8x128xf32>
    %354 = arith.select %17, %353, %352 : vector<8x128xi1>, vector<8x128xf32>
    %355 = arith.negf %354 : vector<8x128xf32>
    %356 = math.exp %355 : vector<8x128xf32>
    %cst_49 = arith.constant 1.000000e+00 : f32
    %357 = vector.broadcast %cst_49 : f32 to vector<8x128xf32>
    %358 = arith.addf %357, %356 : vector<8x128xf32>
    %359 = arith.divf %357, %358 : vector<8x128xf32>
    %360 = arith.addf %359, %359 : vector<8x128xf32>
    %cst_50 = arith.constant 1.000000e+00 : f32
    %361 = vector.broadcast %cst_50 : f32 to vector<8x128xf32>
    %362 = arith.subf %360, %361 : vector<8x128xf32>
    %363 = arith.select %17, %362, %359 : vector<8x128xi1>, vector<8x128xf32>
    %364 = vector.extract_strided_slice %363 {offsets = [0, 0], sizes = [8, 32], strides = [1, 1]} : vector<8x128xf32> to vector<8x32xf32>
    %365 = vector.extract_strided_slice %363 {offsets = [0, 32], sizes = [8, 32], strides = [1, 1]} : vector<8x128xf32> to vector<8x32xf32>
    %366 = vector.extract_strided_slice %363 {offsets = [0, 64], sizes = [8, 32], strides = [1, 1]} : vector<8x128xf32> to vector<8x32xf32>
    %367 = vector.extract_strided_slice %363 {offsets = [0, 96], sizes = [8, 32], strides = [1, 1]} : vector<8x128xf32> to vector<8x32xf32>
    %368 = arith.mulf %365, %322 : vector<8x32xf32>
    %369 = arith.mulf %364, %366 : vector<8x32xf32>
    %370 = arith.addf %368, %369 : vector<8x32xf32>
    %371 = math.tanh %370 : vector<8x32xf32>
    %372 = arith.mulf %367, %371 : vector<8x32xf32>
    %373 = tpu.concatenate %351, %372 in 1 : vector<8x32xf32>, vector<8x32xf32> -> vector<8x64xf32>
    %cst_51 = arith.constant dense<0.000000e+00> : vector<8x256xf32>
    %374 = tpu.matmul %373, %10, %cst_51 {dimension_numbers = #tpu.dot_dimension_numbers<[1], [0], [0], [1], [0, 0, 1, 1], [], []>} : vector<8x64xf32>, vector<64x256xf32>, vector<8x256xf32> -> vector<8x256xf32>
    %375 = vector.broadcast %11 : vector<1x256xf32> to vector<8x256xf32>
    %376 = arith.addf %374, %375 : vector<8x256xf32>
    %377 = vector.extract_strided_slice %376 {offsets = [0, 128], sizes = [8, 128], strides = [1, 1]} : vector<8x256xf32> to vector<8x128xf32>
    %378 = arith.addf %377, %377 : vector<8x128xf32>
    %379 = arith.select %17, %378, %377 : vector<8x128xi1>, vector<8x128xf32>
    %380 = arith.negf %379 : vector<8x128xf32>
    %381 = math.exp %380 : vector<8x128xf32>
    %cst_52 = arith.constant 1.000000e+00 : f32
    %382 = vector.broadcast %cst_52 : f32 to vector<8x128xf32>
    %383 = arith.addf %382, %381 : vector<8x128xf32>
    %384 = arith.divf %382, %383 : vector<8x128xf32>
    %385 = arith.addf %384, %384 : vector<8x128xf32>
    %cst_53 = arith.constant 1.000000e+00 : f32
    %386 = vector.broadcast %cst_53 : f32 to vector<8x128xf32>
    %387 = arith.subf %385, %386 : vector<8x128xf32>
    %388 = arith.select %17, %387, %384 : vector<8x128xi1>, vector<8x128xf32>
    %389 = vector.extract_strided_slice %388 {offsets = [0, 0], sizes = [8, 32], strides = [1, 1]} : vector<8x128xf32> to vector<8x32xf32>
    %390 = vector.extract_strided_slice %388 {offsets = [0, 32], sizes = [8, 32], strides = [1, 1]} : vector<8x128xf32> to vector<8x32xf32>
    %391 = vector.extract_strided_slice %388 {offsets = [0, 64], sizes = [8, 32], strides = [1, 1]} : vector<8x128xf32> to vector<8x32xf32>
    %392 = vector.extract_strided_slice %388 {offsets = [0, 96], sizes = [8, 32], strides = [1, 1]} : vector<8x128xf32> to vector<8x32xf32>
    %393 = arith.mulf %390, %370 : vector<8x32xf32>
    %394 = arith.mulf %389, %391 : vector<8x32xf32>
    %395 = arith.addf %393, %394 : vector<8x32xf32>
    %396 = math.tanh %395 : vector<8x32xf32>
    %397 = arith.mulf %392, %396 : vector<8x32xf32>
    %398 = tpu.concatenate %397, %395 in 0 : vector<8x32xf32>, vector<8x32xf32> -> vector<16x32xf32>
    %c0_54 = arith.constant 0 : index
    %c0_55 = arith.constant 0 : index
    %399 = vector.load %arg6[%c0_54, %c0_55] : memref<32x32xf32, #tpu.memory_space<vmem>>, vector<32x32xf32>
    %cst_56 = arith.constant dense<0.000000e+00> : vector<16x32xf32>
    %400 = tpu.matmul %398, %399, %cst_56 {dimension_numbers = #tpu.dot_dimension_numbers<[1], [0], [0], [1], [0, 0, 1, 1], [], []>} : vector<16x32xf32>, vector<32x32xf32>, vector<16x32xf32> -> vector<16x32xf32>
    %c0_57 = arith.constant 0 : index
    %c0_58 = arith.constant 0 : index
    %401 = vector.load %arg7[%c0_57, %c0_58] : memref<1x32xf32, #tpu.memory_space<vmem>>, vector<1x32xf32>
    %402 = vector.broadcast %401 : vector<1x32xf32> to vector<16x32xf32>
    %403 = arith.addf %400, %402 : vector<16x32xf32>
    %cst_59 = arith.constant 0.000000e+00 : f32
    %404 = vector.broadcast %cst_59 : f32 to vector<16x32xf32>
    %405 = arith.maximumf %403, %404 : vector<16x32xf32>
    %c0_60 = arith.constant 0 : index
    %c0_61 = arith.constant 0 : index
    %406 = vector.load %arg8[%c0_60, %c0_61] : memref<16x32xf32, #tpu.memory_space<vmem>>, vector<16x32xf32>
    tpu.vector_store %arg8[%c0_60, %c0_61], %405 {strides = array<i32>} : memref<16x32xf32, #tpu.memory_space<vmem>>, vector<16x32xf32>,
    return
  }
}

</mosaic_0001>

<bundles_post_ra>
// kernel: tpu_custom_call.1
= control target key start
LH: loop header
LB: loop body
LE: loop exit
PB: predicated region body
PF: predicated region fallthrough
CT: control target
= control target key end

     0   :  { %13 = vsyncpa [#allocation3], 0  ;;  %s2458_s0 = inlined_call_operand.vmem [shape: f32[64,32], index: 0, kind: input, shape index: {}]   ;;  %s2459_s1 = inlined_call_operand.vmem [shape: f32[32,32], index: 1, kind: input, shape index: {}]   ;;  %s2460_s2 = inlined_call_operand.vmem [shape: f32[1,32], index: 2, kind: input, shape index: {}]   ;;  %s2461_s3 = inlined_call_operand.vmem [shape: f32[32,128], index: 3, kind: input, shape index: {}]   ;;  %s2462_s4 = inlined_call_operand.hbm [shape: f32[64,256], index: 4, kind: input, shape index: {}]   ;;  %s2463_s5 = inlined_call_operand.vmem [shape: f32[1,256], index: 5, kind: input, shape index: {}]   ;;  %s2464_s6 = inlined_call_operand.vmem [shape: f32[32,32], index: 6, kind: input, shape index: {}]   ;;  %s2465_s7 = inlined_call_operand.vmem [shape: f32[1,32], index: 7, kind: input, shape index: {}]   ;;  %s2466_s8 = inlined_call_operand.hbm [shape: f32[16,32], index: 8, kind: output, shape index: {}]  }
   0x1   :  { %14 = vsyncpa [#allocation4], 0  ;;  %s1889_s27 = smov [#allocation2]  }
   0x2   :  { %s28_s28 = sshll.u32 %s1889_s27, 4  ;;  %s29_s28 = int_to_ptr.vmem [resolvable:$true] %s28_s28 }
   0x3   :  { %s1853_s29 = scalar_lea.vmem %s29_s28, 2048  ;;  %p1858_p1 = scmp.lt.s32.totalorder %s29_s28, %s29_s28 }
   0x4   :  { %p1854_p0 = scmp.ne.s32.totalorder %s29_s28, %s1853_s29  ;;  %p1859_p2 = scmp.lt.s32.totalorder %s1853_s29, %s1853_s29 }
   0x6   :  { %p1860_p3 = por %p1859_p2, %p1858_p1 }
   0x8   :  { %p1861_p4 = pnand %p1860_p3, %p1854_p0 }
   0xa   :  { %1864 = shalt.err (!%p1861_p4)
}
   0xb   :  { %s1890_s30 = smov 256   ;;  %s1891_s9 = smov 16  }
   0xc   :  { %34 = dma.hbm_to_vmem [thread:$0]  %s2462_s4, 2048, %s29_s28, [#allocation3], %s1890_s30, %s1890_s30, %s1891_s9  }
   0xd   :  { %1885 = dma.done.wait [#allocation3], 2048  }
   0xe   :  { %1886 = vsyncadd [#allocation3], 4294965248  ;;  %vm63_vm0 = vcmask 261120   ;;  %v55_v0 = vld [vmem:[%s2459_s1 + $0x18] sm:$0xff]  ;;  %v54_v1 = vld [vmem:[%s2459_s1 + $0x10] sm:$0xff]  ;;  %v351_v17 = vlaneseq  ;;  %s1893_s21 = smov 96  }
   0xf   :  { %1688 = vmatprep.subr.mxu0 %v55_v0  ;;  %v44_v2 = vld [vmem:[%s2458_s0] sm:$0xff]  ;;  %v53_v3 = vld [vmem:[%s2459_s1 + $0x8] sm:$0xff]  ;;  %v204_v6 = vld [vmem:[%s2461_s3 + $0x18] sm:$0xff]  ;;  %v1895_v61 = vmov 0.0   ;;  %vm395_vm4 = vcmask 523264  }
  0x10   :  { %1689 = vmatpush3.msra.mxu0 %v55_v0  ;;  %1696 = vmatprep.mubr.msk.f32.mxu0 %vm63_vm0, %v44_v2  ;;  %v52_v4 = vld [vmem:[%s2459_s1] sm:$0xff]  ;;  %v45_v5 = vld [vmem:[%s2458_s0 + $0x8] sm:$0xff]  ;;  %v203_v7 = vld [vmem:[%s2461_s3 + $0x10] sm:$0xff]  ;;  %v1988_v18 = vshrl.u32 %v351_v17, 7  ;;  %v352_v21 = vand.u32 127, %v351_v17 }
  0x11   :  { %1690 = vmatprep.subr.mxu0 %v54_v1  ;;  %1708 = vmatprep.subr.mxu1 %v204_v6  ;;  %v202_v8 = vld [vmem:[%s2461_s3 + $0x8] sm:$0xff]  ;;  %v201_v9 = vld [vmem:[%s2461_s3] sm:$0xff]  ;;  %v46_v38 = vld [vmem:[%s2458_s0 + $0x10] sm:$0xff] }
  0x12   :  { %1691 = vmatpush3.msra.mxu0 %v54_v1  ;;  %1709 = vmatpush3.msra.mxu1 %v204_v6  ;;  %v1982_v10 = vld [vmem:[%s2460_s2] ss:$0 sm:$0xff]  ;;  %v359_v19 = vsub.s32 0, %v1988_v18  ;;  %vm353_vm1 = vcmp.ge.s32.totalorder %v352_v21, 64  ;;  %vm354_vm2 = vcmp.lt.s32.totalorder %v352_v21, 96  ;;  %v47_v39 = vld [vmem:[%s2458_s0 + $0x18] sm:$0xff] }
  0x13   :  { %1692 = vmatprep.subr.mxu0 %v53_v3  ;;  %1710 = vmatprep.subr.mxu1 %v203_v7  ;;  %v1994_v20 = vld [vmem:[%s2463_s5] sm:$0x3]  ;;  %vm2002_vm3 = vmand %vm353_vm1, %vm354_vm2  ;;  %s1892_s5 = smov 64   ;;  %v2021_v40 = vld [vmem:[#allocation2 + $0x78] sm:$0xff] }
  0x14   :  { %1693 = vmatpush3.msra.mxu0 %v53_v3  ;;  %1711 = vmatpush3.msra.mxu1 %v203_v7  ;;  %v1997_v22 = vrot.slane %v1994_v20, %v359_v19  ;;  %v2025_v41 = vld [vmem:[#allocation2 + $0x70] sm:$0xff]  ;;  %v2027_v42 = vld [vmem:[#allocation2 + $0x68] sm:$0xff]  ;;  %v48_v43 = vld [vmem:[%s2458_s0 + $0x20] sm:$0xff] }
  0x15   :  { %1694 = vmatprep.subr.mxu0 %v52_v4  ;;  %1712 = vmatprep.subr.mxu1 %v202_v8  ;;  %v2033_v44 = vld [vmem:[#allocation2 + $0x60] sm:$0xff]  ;;  %v49_v45 = vld [vmem:[%s2458_s0 + $0x28] sm:$0xff]  ;;  %v2041_v46 = vld [vmem:[#allocation2 + $0x58] sm:$0xff] }
  0x16   :  { %1695 = vmatpush3.msra.mxu0 %v52_v4  ;;  %1713 = vmatpush3.msra.mxu1 %v202_v8  ;;  %v2044_v47 = vld [vmem:[#allocation2 + $0x50] sm:$0xff]  ;;  %v2051_v49 = vld [vmem:[#allocation2 + $0x48] sm:$0xff]  ;;  %v2056_v50 = vld [vmem:[#allocation2 + $0x40] sm:$0xff] }
  0x17   :  { %1697 = vmatmul.mubr.msk.f32.vlgmr.msra.gmra.mxu0 %vm63_vm0, %v45_v5  ;;  %1714 = vmatprep.subr.mxu1 %v201_v9  ;;  %v50_v48 = vld [vmem:[%s2458_s0 + $0x30] sm:$0xff]  ;;  %v51_v51 = vld [vmem:[%s2458_s0 + $0x38] sm:$0xff]  ;;  %v2073_v55 = vld [vmem:[#allocation2 + $0x28] sm:$0xff]  ;;  %s1894_s0 = smov 32  }
  0x18   :  { %1715 = vmatpush3.msra.mxu1 %v201_v9  ;;  %1699 = vmatprep.mubr.msk.f32.mxu0 %vm63_vm0, %v46_v38  ;;  %v2064_v52 = vld [vmem:[#allocation2 + $0x38] sm:$0xff]  ;;  %v2068_v54 = vld [vmem:[#allocation2 + $0x30] sm:$0xff]  ;;  %v2076_v56 = vld [vmem:[#allocation2 + $0x20] sm:$0xff] }
  0x19   :  { %415 = vmatprep.subr.mxu0 %v2021_v40  ;;  %553 = vmatprep.subr.mxu1 %v2021_v40  ;;  %v2080_v57 = vld [vmem:[#allocation2 + $0x18] sm:$0xff]  ;;  %v2084_v58 = vld [vmem:[#allocation2 + $0x10] sm:$0xff]  ;;  %v2089_v59 = vld [vmem:[#allocation2 + $0x8] sm:$0xff] }
  0x1a   :  { %416 = vmatpush1.msra.mxu0 %v2025_v41  ;;  %v2092_v60 = vld [vmem:[#allocation2] sm:$0xff]  ;;  %v1485_v26 = vld [vmem:[%s2464_s6 + $0x18] sm:$0xff] }
  0x1b   :  { %1700 = vmatmul.mubr.msk.f32.gmra.mxu0 %vm63_vm0, %v47_v39  ;;  %417 = vmatprep.subr.mxu0 %v2027_v42 }
  0x1c   :  { %1702 = vmatprep.mubr.msk.f32.mxu0 %vm63_vm0, %v48_v43  ;;  %418 = vmatpush1.msra.mxu0 %v2033_v44 }
  0x1d   :  { %419 = vmatprep.subr.mxu0 %v2041_v46 }
  0x1e   :  { %420 = vmatpush1.msra.mxu0 %v2044_v47 }
  0x1f   :  { %1703 = vmatmul.mubr.msk.f32.gmra.mxu0 %vm63_vm0, %v49_v45  ;;  %421 = vmatprep.subr.mxu0 %v2051_v49 }
  0x20   :  { %1705 = vmatprep.mubr.msk.f32.mxu0 %vm63_vm0, %v50_v48  ;;  %422 = vmatpush1.msra.mxu0 %v2056_v50 }
  0x21   :  { %423 = vmatprep.subr.mxu0 %v2064_v52 }
  0x22   :  { %424 = vmatpush1.msra.mxu0 %v2068_v54 }
  0x23   :  { %1706 = vmatmul.mubr.msk.f32.gmra.mxu0 %vm63_vm0, %v51_v51  ;;  %425 = vmatprep.subr.mxu0 %v2073_v55 }
  0x24   :  { %426 = vmatpush1.msra.mxu0 %v2076_v56  ;;  %463 = vmatprep.mubr.f32.mxu0 %v1895_v61 }
  0x25   :  { %427 = vmatprep.subr.mxu0 %v2080_v57 }
  0x26   :  { %428 = vmatpush1.msra.mxu0 %v2084_v58 }
  0x27   :  { %429 = vmatprep.subr.mxu0 %v2089_v59 }
  0x28   :  { %430 = vmatpush1.msra.mxu0 %v2092_v60 }
  0x29   :  { %697 = vmatprep.subr.mxu0 %v2021_v40 }
  0xd7   :  { %v1698_v11 = vpop.f32.mrf.mxu0 }
  0xd8   :  { %v160_v12 = vadd.f32 %v1698_v11, %v1982_v10 }
  0xd9   :  { %v154_v13 = vpop.f32.mrf.mxu0 }
  0xda   :  { %v155_v14 = vadd.f32 %v1982_v10, %v154_v13  ;;  %v194_v16 = vmax.f32 %v160_v12, 0.0 }
  0xdb   :  { %v1701_v0 = vpop.f32.mrf.mxu0 }
  0xdc   :  { %v193_v15 = vmax.f32 %v155_v14, 0.0  ;;  %v170_v1 = vadd.f32 %v1701_v0, %v1982_v10 }
  0xdd   :  { %v164_v2 = vpop.f32.mrf.mxu0 }
  0xde   :  { %1716 = vmatprep.mubr.msk.f32.mxu1 %vm63_vm0, %v193_v15  ;;  %v165_v3 = vadd.f32 %v1982_v10, %v164_v2  ;;  %v196_v4 = vmax.f32 %v170_v1, 0.0 }
  0xdf   :  { %1717 = vmatmul.mubr.msk.f32.vlgmr.msra.gmra.mxu1 %vm63_vm0, %v194_v16  ;;  %v1704_v5 = vpop.f32.mrf.mxu0 }
  0xe0   :  { %554 = vmatpush1.msra.mxu1 %v2025_v41  ;;  %v195_v6 = vmax.f32 %v165_v3, 0.0  ;;  %v180_v7 = vadd.f32 %v1704_v5, %v1982_v10 }
  0xe1   :  { %555 = vmatprep.subr.mxu1 %v2027_v42  ;;  %v174_v8 = vpop.f32.mrf.mxu0 }
  0xe2   :  { %556 = vmatpush1.msra.mxu1 %v2033_v44  ;;  %v175_v9 = vadd.f32 %v1982_v10, %v174_v8  ;;  %1719 = vmatprep.mubr.msk.f32.mxu1 %vm63_vm0, %v195_v6  ;;  %v198_v11 = vmax.f32 %v180_v7, 0.0 }
  0xe3   :  { %557 = vmatprep.subr.mxu1 %v2041_v46  ;;  %v1707_v12 = vpop.f32.mrf.mxu0  ;;  %1720 = vmatmul.mubr.msk.f32.gmra.mxu1 %vm63_vm0, %v196_v4 }
  0xe4   :  { %558 = vmatpush1.msra.mxu1 %v2044_v47  ;;  %v197_v13 = vmax.f32 %v175_v9, 0.0  ;;  %v190_v14 = vadd.f32 %v1707_v12, %v1982_v10 }
  0xe5   :  { %559 = vmatprep.subr.mxu1 %v2051_v49  ;;  %v184_v15 = vpop.f32.mrf.mxu0 }
  0xe6   :  { %560 = vmatpush1.msra.mxu1 %v2056_v50  ;;  %v185_v16 = vadd.f32 %v1982_v10, %v184_v15  ;;  %1722 = vmatprep.mubr.msk.f32.mxu1 %vm63_vm0, %v197_v13  ;;  %v200_v17 = vmax.f32 %v190_v14, 0.0  ;;  %v392_v10 = vsub.s32 1, %v1988_v18 }
  0xe7   :  { %561 = vmatprep.subr.mxu1 %v2064_v52  ;;  %1723 = vmatmul.mubr.msk.f32.gmra.mxu1 %vm63_vm0, %v198_v11 }
  0xe8   :  { %562 = vmatpush1.msra.mxu1 %v2068_v54  ;;  %v199_v19 = vmax.f32 %v185_v16, 0.0 }
  0xe9   :  { %563 = vmatprep.subr.mxu1 %v2073_v55 }
  0xea   :  { %564 = vmatpush1.msra.mxu1 %v2076_v56  ;;  %1725 = vmatprep.mubr.msk.f32.mxu1 %vm63_vm0, %v199_v19 }
  0xeb   :  { %565 = vmatprep.subr.mxu1 %v2080_v57  ;;  %1726 = vmatmul.mubr.msk.f32.gmra.mxu1 %vm63_vm0, %v200_v17 }
  0xec   :  { %566 = vmatpush1.msra.mxu1 %v2084_v58  ;;  %601 = vmatprep.mubr.f32.mxu1 %v1895_v61 }
  0xed   :  { %567 = vmatprep.subr.mxu1 %v2089_v59 }
  0xee   :  { %568 = vmatpush1.msra.mxu1 %v2092_v60 }
  0xef   :  { %837 = vmatprep.subr.mxu1 %v2021_v40 }
 0x19f   :  { %v1999_v23 = vpop.f32.mrf.mxu1 }
 0x1a1   :  { %v295_v24 = vpop.f32.mrf.mxu1 }
 0x1a2   :  { %v362_v25 = vadd.f32 %v1997_v22, %v295_v24 }
 0x1a3   :  { %v2189_v19 = vpop.f32.mrf.mxu1 }
 0x1a4   :  { %v363_v27 = vadd.f32 %v362_v25, %v362_v25 }
 0x1a6   :  { %v364_v28 = vsel %vm2002_vm3, %v363_v27, %v362_v25  ;;  %v2144_v25 = vrot.slane %v1994_v20, %v392_v10 }
 0x1a7   :  { %v1615_v29 = vmul.f32 -1.442695, %v364_v28 }
 0x1a9   :  { %1749 = vpow2.f32 %v1615_v29 }
 0x1b6   :  { %v1750_v30 = vpop.eup %1749 }
 0x1b7   :  { %v368_v31 = vadd.f32 1.0, %v1750_v30 }
 0x1b9   :  { %1751 = vrcp.f32 %v368_v31 }
 0x1c6   :  { %v1752_v32 = vpop.eup %1751 }
 0x1c7   :  { %v371_v33 = vadd.f32 %v1752_v32, %v1752_v32 }
 0x1c9   :  { %v1616_v34 = vadd.f32 -1.0, %v371_v33 }
 0x1cb   :  { %v2010_v35 = vsel %vm2002_vm3, %v1616_v34, %v1752_v32 }
 0x1cc   :  { %375 = vrot.lane.b32.xlu0 %v2010_v35, %s1892_s5 }
 0x23e   :  { %v376_v36 = vpop.permute.xlu0 %375 }
 0x23f   :  { %v378_v37 = vmul.f32 %v376_v36, %v2010_v35 }
 0x241   :  { %1753 = vtanh.f32 %v378_v37 }
 0x24e   :  { %v1754_v53 = vpop.eup %1753 }
 0x24f   :  { %381 = vrot.lane.b32.xlu0 %v1754_v53, %s1893_s21 }
 0x253   :  { %483 = vrot.lane.b32.xlu0 %v378_v37, %s1894_s0 }
 0x2c1   :  { %v382_v62 = vpop.permute.xlu0 %381 }
 0x2c2   :  { %v384_v63 = vmul.f32 %v382_v62, %v2010_v35 }
 0x2c4   :  { %386 = vrot.lane.b32.xlu1 %v384_v63, %s1894_s0 }
 0x2c5   :  { %v484_v0 = vpop.permute.xlu0 %483 }
 0x336   :  { %v387_v21 = vpop.permute.xlu1 %386 }
 0x337   :  { %v389_v24 = vsel %vm63_vm0, %v387_v21, 0.0  ;;  %v305_v21 = vpop.f32.mrf.mxu1 }
 0x338   :  { %1617 = vmatmul.mubr.msk.f32.vlgmr.msra.gmra.mxu0 %vm395_vm4, %v389_v24 }
 0x339   :  { %698 = vmatpush1.msra.mxu0 %v2025_v41  ;;  %745 = vmatprep.mubr.f32.mxu0 %v1895_v61  ;;  %v2191_v24 = vpop.f32.mrf.mxu1 }
 0x33a   :  { %699 = vmatprep.subr.mxu0 %v2027_v42 }
 0x33b   :  { %700 = vmatpush1.msra.mxu0 %v2033_v44  ;;  %v2193_v10 = vpop.f32.mrf.mxu1 }
 0x33c   :  { %701 = vmatprep.subr.mxu0 %v2041_v46 }
 0x33d   :  { %702 = vmatpush1.msra.mxu0 %v2044_v47 }
 0x33e   :  { %703 = vmatprep.subr.mxu0 %v2051_v49 }
 0x33f   :  { %704 = vmatpush1.msra.mxu0 %v2056_v50 }
 0x340   :  { %705 = vmatprep.subr.mxu0 %v2064_v52 }
 0x341   :  { %706 = vmatpush1.msra.mxu0 %v2068_v54 }
 0x342   :  { %707 = vmatprep.subr.mxu0 %v2073_v55 }
 0x343   :  { %708 = vmatpush1.msra.mxu0 %v2076_v56 }
 0x344   :  { %709 = vmatprep.subr.mxu0 %v2080_v57 }
 0x345   :  { %710 = vmatpush1.msra.mxu0 %v2084_v58 }
 0x346   :  { %711 = vmatprep.subr.mxu0 %v2089_v59 }
 0x347   :  { %712 = vmatpush1.msra.mxu0 %v2092_v60 }
 0x348   :  { %977 = vmatprep.subr.mxu0 %v2021_v40 }
 0x3f8   :  { %v465_v27 = vpop.f32.mrf.mxu0 }
 0x3f9   :  { %v466_v28 = vadd.f32 %v465_v27, %v1997_v22  ;;  %v2195_v27 = vpop.f32.mrf.mxu1 }
 0x3fa   :  { %v467_v29 = vpop.f32.mrf.mxu0 }
 0x3fb   :  { %v470_v30 = vadd.f32 %v1999_v23, %v466_v28  ;;  %v468_v31 = vadd.f32 %v467_v29, %v2144_v25  ;;  %v2197_v28 = vpop.f32.mrf.mxu1 }
 0x3fd   :  { %v471_v32 = vadd.f32 %v470_v30, %v470_v30  ;;  %v503_v33 = vadd.f32 %v468_v31, %v468_v31 }
 0x3ff   :  { %v472_v34 = vsel %vm2002_vm3, %v471_v32, %v470_v30  ;;  %v504_v35 = vsel %vm2002_vm3, %v503_v33, %v468_v31 }
 0x400   :  { %v1618_v18 = vmul.f32 -1.442695, %v472_v34  ;;  %v1620_v36 = vmul.f32 -1.442695, %v504_v35 }
 0x402   :  { %1755 = vpow2.f32 %v1618_v18 }
 0x403   :  { %1757 = vpow2.f32 %v1620_v36 }
 0x40f   :  { %v1756_v20 = vpop.eup %1755 }
 0x410   :  { %v1758_v37 = vpop.eup %1757  ;;  %v476_v38 = vadd.f32 1.0, %v1756_v20 }
 0x411   :  { %v508_v39 = vadd.f32 1.0, %v1758_v37 }
 0x412   :  { %1759 = vrcp.f32 %v476_v38 }
 0x413   :  { %1761 = vrcp.f32 %v508_v39 }
 0x41f   :  { %v1760_v23 = vpop.eup %1759 }
 0x420   :  { %v1762_v43 = vpop.eup %1761  ;;  %v479_v45 = vadd.f32 %v1760_v23, %v1760_v23 }
 0x421   :  { %v511_v48 = vadd.f32 %v1762_v43, %v1762_v43 }
 0x422   :  { %v1619_v51 = vadd.f32 -1.0, %v479_v45 }
 0x423   :  { %v1621_v53 = vadd.f32 -1.0, %v511_v48 }
 0x424   :  { %v481_v62 = vsel %vm2002_vm3, %v1619_v51, %v1760_v23 }
 0x425   :  { %v513_v63 = vsel %vm2002_vm3, %v1621_v53, %v1762_v43  ;;  %488 = vrot.lane.b32.xlu1 %v481_v62, %s1892_s5  ;;  %v486_v6 = vmul.f32 %v484_v0, %v481_v62 }
 0x426   :  { %515 = vrot.lane.b32.xlu0 %v513_v63, %s1892_s5 }
 0x497   :  { %v489_v1 = vpop.permute.xlu1 %488 }
 0x498   :  { %v491_v2 = vmul.f32 %v489_v1, %v481_v62  ;;  %v516_v3 = vpop.permute.xlu0 %515 }
 0x499   :  { %v2159_v4 = vmul.f32 %v516_v3, %v513_v63 }
 0x49a   :  { %493 = vrot.lane.b32.xlu1 %v491_v2, %s1894_s0 }
 0x49b   :  { %1763 = vtanh.f32 %v2159_v4 }
 0x4a8   :  { %v1764_v5 = vpop.eup %1763 }
 0x4a9   :  { %521 = vrot.lane.b32.xlu0 %v1764_v5, %s1893_s21 }
 0x50c   :  { %v494_v7 = vpop.permute.xlu1 %493 }
 0x50d   :  { %v2164_v8 = vadd.f32 %v494_v7, %v486_v6 }
 0x50f   :  { %1765 = vtanh.f32 %v2164_v8 }
 0x51b   :  { %v522_v9 = vpop.permute.xlu0 %521 }
 0x51c   :  { %v1766_v11 = vpop.eup %1765  ;;  %v524_v12 = vmul.f32 %v522_v9, %v513_v63 }
 0x51d   :  { %499 = vrot.lane.b32.xlu1 %v1766_v11, %s1892_s5 }
 0x51e   :  { %530 = vrot.lane.b32.xlu0 %v524_v12, %s1892_s5 }
 0x58f   :  { %v500_v13 = vpop.permute.xlu1 %499 }
 0x590   :  { %v502_v14 = vmul.f32 %v500_v13, %v481_v62  ;;  %v531_v15 = vpop.permute.xlu0 %530 }
 0x592   :  { %526 = vrot.lane.b32.xlu1 %v502_v14, %s1894_s0 }
 0x604   :  { %v527_v16 = vpop.permute.xlu1 %526 }
 0x605   :  { %v533_v17 = vsel %vm63_vm0, %v527_v16, %v531_v15 }
 0x606   :  { %1622 = vmatmul.mubr.msk.f32.vlgmr.msra.gmra.mxu1 %vm395_vm4, %v533_v17 }
 0x607   :  { %838 = vmatpush1.msra.mxu1 %v2025_v41  ;;  %885 = vmatprep.mubr.f32.mxu1 %v1895_v61 }
 0x608   :  { %839 = vmatprep.subr.mxu1 %v2027_v42 }
 0x609   :  { %840 = vmatpush1.msra.mxu1 %v2033_v44 }
 0x60a   :  { %841 = vmatprep.subr.mxu1 %v2041_v46 }
 0x60b   :  { %842 = vmatpush1.msra.mxu1 %v2044_v47 }
 0x60c   :  { %843 = vmatprep.subr.mxu1 %v2051_v49 }
 0x60d   :  { %844 = vmatpush1.msra.mxu1 %v2056_v50 }
 0x60e   :  { %845 = vmatprep.subr.mxu1 %v2064_v52 }
 0x60f   :  { %846 = vmatpush1.msra.mxu1 %v2068_v54 }
 0x610   :  { %847 = vmatprep.subr.mxu1 %v2073_v55 }
 0x611   :  { %848 = vmatpush1.msra.mxu1 %v2076_v56 }
 0x612   :  { %849 = vmatprep.subr.mxu1 %v2080_v57 }
 0x613   :  { %850 = vmatpush1.msra.mxu1 %v2084_v58 }
 0x614   :  { %851 = vmatprep.subr.mxu1 %v2089_v59 }
 0x615   :  { %852 = vmatpush1.msra.mxu1 %v2092_v60 }
 0x616   :  { %1117 = vmatprep.subr.mxu1 %v2021_v40 }
 0x6c6   :  { %v603_v29 = vpop.f32.mrf.mxu1 }
 0x6c7   :  { %v604_v30 = vadd.f32 %v603_v29, %v1997_v22 }
 0x6c8   :  { %v605_v31 = vpop.f32.mrf.mxu1 }
 0x6c9   :  { %v608_v32 = vadd.f32 %v604_v30, %v305_v21  ;;  %v606_v33 = vadd.f32 %v605_v31, %v2144_v25 }
 0x6cb   :  { %v609_v34 = vadd.f32 %v608_v32, %v608_v32  ;;  %v637_v35 = vadd.f32 %v606_v33, %v606_v33 }
 0x6cd   :  { %v610_v18 = vsel %vm2002_vm3, %v609_v34, %v608_v32  ;;  %v638_v36 = vsel %vm2002_vm3, %v637_v35, %v606_v33 }
 0x6ce   :  { %v1623_v20 = vmul.f32 -1.442695, %v610_v18  ;;  %v1625_v37 = vmul.f32 -1.442695, %v638_v36 }
 0x6d0   :  { %1767 = vpow2.f32 %v1623_v20 }
 0x6d1   :  { %1769 = vpow2.f32 %v1625_v37 }
 0x6dd   :  { %v1768_v38 = vpop.eup %1767 }
 0x6de   :  { %v1770_v39 = vpop.eup %1769  ;;  %v614_v23 = vadd.f32 1.0, %v1768_v38 }
 0x6df   :  { %v642_v43 = vadd.f32 1.0, %v1770_v39 }
 0x6e0   :  { %1771 = vrcp.f32 %v614_v23 }
 0x6e1   :  { %1773 = vrcp.f32 %v642_v43 }
 0x6ed   :  { %v1772_v45 = vpop.eup %1771 }
 0x6ee   :  { %v1774_v48 = vpop.eup %1773  ;;  %v617_v51 = vadd.f32 %v1772_v45, %v1772_v45 }
 0x6ef   :  { %v645_v53 = vadd.f32 %v1774_v48, %v1774_v48 }
 0x6f0   :  { %v1624_v62 = vadd.f32 -1.0, %v617_v51 }
 0x6f1   :  { %v1626_v63 = vadd.f32 -1.0, %v645_v53 }
 0x6f2   :  { %v619_v0 = vsel %vm2002_vm3, %v1624_v62, %v1772_v45 }
 0x6f3   :  { %v647_v1 = vsel %vm2002_vm3, %v1626_v63, %v1774_v48  ;;  %622 = vrot.lane.b32.xlu1 %v619_v0, %s1892_s5  ;;  %v620_v9 = vmul.f32 %v619_v0, %v2164_v8 }
 0x6f4   :  { %654 = vrot.lane.b32.xlu0 %v647_v1, %s1892_s5 }
 0x6f7   :  { %649 = vrot.lane.b32.xlu1 %v2159_v4, %s1894_s0 }
 0x765   :  { %v623_v2 = vpop.permute.xlu1 %622 }
 0x766   :  { %v655_v3 = vpop.permute.xlu0 %654  ;;  %v625_v5 = vmul.f32 %v623_v2, %v619_v0 }
 0x767   :  { %v657_v6 = vmul.f32 %v655_v3, %v647_v1 }
 0x768   :  { %627 = vrot.lane.b32.xlu0 %v625_v5, %s1894_s0 }
 0x769   :  { %659 = vrot.lane.b32.xlu1 %v657_v6, %s1894_s0  ;;  %v650_v7 = vpop.permute.xlu1 %649 }
 0x76a   :  { %v652_v11 = vmul.f32 %v650_v7, %v647_v1 }
 0x7da   :  { %v628_v12 = vpop.permute.xlu0 %627 }
 0x7db   :  { %v2216_v13 = vadd.f32 %v628_v12, %v620_v9  ;;  %v660_v14 = vpop.permute.xlu1 %659 }
 0x7dc   :  { %v2218_v15 = vadd.f32 %v660_v14, %v652_v11 }
 0x7dd   :  { %1775 = vtanh.f32 %v2216_v13 }
 0x7de   :  { %1777 = vtanh.f32 %v2218_v15 }
 0x7ea   :  { %v1776_v4 = vpop.eup %1775 }
 0x7eb   :  { %v1778_v16 = vpop.eup %1777  ;;  %633 = vrot.lane.b32.xlu0 %v1776_v4, %s1892_s5 }
 0x7ec   :  { %665 = vrot.lane.b32.xlu1 %v1778_v16, %s1892_s5 }
 0x85d   :  { %v634_v17 = vpop.permute.xlu0 %633 }
 0x85e   :  { %v666_v21 = vpop.permute.xlu1 %665  ;;  %v636_v8 = vmul.f32 %v634_v17, %v619_v0 }
 0x85f   :  { %v668_v29 = vmul.f32 %v666_v21, %v647_v1 }
 0x860   :  { %670 = vrot.lane.b32.xlu0 %v636_v8, %s1894_s0 }
 0x861   :  { %674 = vrot.lane.b32.xlu1 %v668_v29, %s1892_s5 }
 0x8d2   :  { %v671_v30 = vpop.permute.xlu0 %670 }
 0x8d3   :  { %v675_v31 = vpop.permute.xlu1 %674 }
 0x8d4   :  { %v677_v32 = vsel %vm63_vm0, %v671_v30, %v675_v31 }
 0x8d5   :  { %1627 = vmatmul.mubr.msk.f32.vlgmr.msra.gmra.mxu0 %vm395_vm4, %v677_v32 }
 0x8d6   :  { %978 = vmatpush1.msra.mxu0 %v2025_v41  ;;  %1025 = vmatprep.mubr.f32.mxu0 %v1895_v61 }
 0x8d7   :  { %979 = vmatprep.subr.mxu0 %v2027_v42 }
 0x8d8   :  { %980 = vmatpush1.msra.mxu0 %v2033_v44 }
 0x8d9   :  { %981 = vmatprep.subr.mxu0 %v2041_v46 }
 0x8da   :  { %982 = vmatpush1.msra.mxu0 %v2044_v47 }
 0x8db   :  { %983 = vmatprep.subr.mxu0 %v2051_v49 }
 0x8dc   :  { %984 = vmatpush1.msra.mxu0 %v2056_v50 }
 0x8dd   :  { %985 = vmatprep.subr.mxu0 %v2064_v52 }
 0x8de   :  { %986 = vmatpush1.msra.mxu0 %v2068_v54 }
 0x8df   :  { %987 = vmatprep.subr.mxu0 %v2073_v55 }
 0x8e0   :  { %988 = vmatpush1.msra.mxu0 %v2076_v56 }
 0x8e1   :  { %989 = vmatprep.subr.mxu0 %v2080_v57 }
 0x8e2   :  { %990 = vmatpush1.msra.mxu0 %v2084_v58 }
 0x8e3   :  { %991 = vmatprep.subr.mxu0 %v2089_v59 }
 0x8e4   :  { %992 = vmatpush1.msra.mxu0 %v2092_v60 }
 0x8e5   :  { %1257 = vmatprep.subr.mxu0 %v2021_v40 }
 0x995   :  { %v747_v33 = vpop.f32.mrf.mxu0 }
 0x996   :  { %v748_v34 = vadd.f32 %v747_v33, %v1997_v22 }
 0x997   :  { %v749_v35 = vpop.f32.mrf.mxu0 }
 0x998   :  { %v752_v18 = vadd.f32 %v2189_v19, %v748_v34  ;;  %v750_v36 = vadd.f32 %v749_v35, %v2144_v25 }
 0x99a   :  { %v753_v20 = vadd.f32 %v752_v18, %v752_v18  ;;  %v781_v37 = vadd.f32 %v750_v36, %v750_v36 }
 0x99c   :  { %v754_v38 = vsel %vm2002_vm3, %v753_v20, %v752_v18  ;;  %v782_v39 = vsel %vm2002_vm3, %v781_v37, %v750_v36 }
 0x99d   :  { %v1628_v23 = vmul.f32 -1.442695, %v754_v38  ;;  %v1630_v43 = vmul.f32 -1.442695, %v782_v39 }
 0x99f   :  { %1779 = vpow2.f32 %v1628_v23 }
 0x9a0   :  { %1781 = vpow2.f32 %v1630_v43 }
 0x9ac   :  { %v1780_v45 = vpop.eup %1779 }
 0x9ad   :  { %v1782_v48 = vpop.eup %1781  ;;  %v758_v51 = vadd.f32 1.0, %v1780_v45 }
 0x9ae   :  { %v786_v53 = vadd.f32 1.0, %v1782_v48 }
 0x9af   :  { %1783 = vrcp.f32 %v758_v51 }
 0x9b0   :  { %1785 = vrcp.f32 %v786_v53 }
 0x9bc   :  { %v1784_v19 = vpop.eup %1783 }
 0x9bd   :  { %v1786_v62 = vpop.eup %1785  ;;  %v761_v63 = vadd.f32 %v1784_v19, %v1784_v19 }
 0x9be   :  { %v789_v0 = vadd.f32 %v1786_v62, %v1786_v62 }
 0x9bf   :  { %v1629_v1 = vadd.f32 -1.0, %v761_v63 }
 0x9c0   :  { %v1631_v2 = vadd.f32 -1.0, %v789_v0 }
 0x9c1   :  { %v763_v3 = vsel %vm2002_vm3, %v1629_v1, %v1784_v19 }
 0x9c2   :  { %v791_v5 = vsel %vm2002_vm3, %v1631_v2, %v1786_v62  ;;  %766 = vrot.lane.b32.xlu0 %v763_v3, %s1892_s5  ;;  %v764_v12 = vmul.f32 %v763_v3, %v2216_v13 }
 0x9c3   :  { %794 = vrot.lane.b32.xlu1 %v791_v5, %s1892_s5  ;;  %v792_v14 = vmul.f32 %v791_v5, %v2218_v15 }
 0xa34   :  { %v767_v6 = vpop.permute.xlu0 %766 }
 0xa35   :  { %v795_v7 = vpop.permute.xlu1 %794  ;;  %v769_v9 = vmul.f32 %v767_v6, %v763_v3 }
 0xa36   :  { %v797_v11 = vmul.f32 %v795_v7, %v791_v5 }
 0xa37   :  { %771 = vrot.lane.b32.xlu0 %v769_v9, %s1894_s0 }
 0xa38   :  { %799 = vrot.lane.b32.xlu1 %v797_v11, %s1894_s0 }
 0xaa9   :  { %v772_v4 = vpop.permute.xlu0 %771 }
 0xaaa   :  { %v800_v16 = vpop.permute.xlu1 %799  ;;  %v2262_v17 = vadd.f32 %v772_v4, %v764_v12 }
 0xaab   :  { %v2264_v21 = vadd.f32 %v800_v16, %v792_v14 }
 0xaac   :  { %1787 = vtanh.f32 %v2262_v17 }
 0xaad   :  { %1789 = vtanh.f32 %v2264_v21 }
 0xab9   :  { %v1788_v8 = vpop.eup %1787 }
 0xaba   :  { %v1790_v29 = vpop.eup %1789  ;;  %777 = vrot.lane.b32.xlu0 %v1788_v8, %s1892_s5 }
 0xabb   :  { %805 = vrot.lane.b32.xlu1 %v1790_v29, %s1892_s5 }
 0xb2c   :  { %v778_v30 = vpop.permute.xlu0 %777 }
 0xb2d   :  { %v806_v13 = vpop.permute.xlu1 %805  ;;  %v780_v31 = vmul.f32 %v778_v30, %v763_v3 }
 0xb2e   :  { %v808_v15 = vmul.f32 %v806_v13, %v791_v5 }
 0xb2f   :  { %810 = vrot.lane.b32.xlu0 %v780_v31, %s1894_s0 }
 0xb30   :  { %814 = vrot.lane.b32.xlu1 %v808_v15, %s1892_s5 }
 0xba1   :  { %v811_v32 = vpop.permute.xlu0 %810 }
 0xba2   :  { %v815_v33 = vpop.permute.xlu1 %814 }
 0xba3   :  { %v817_v34 = vsel %vm63_vm0, %v811_v32, %v815_v33 }
 0xba4   :  { %1632 = vmatmul.mubr.msk.f32.vlgmr.msra.gmra.mxu1 %vm395_vm4, %v817_v34 }
 0xba5   :  { %1118 = vmatpush1.msra.mxu1 %v2025_v41  ;;  %1165 = vmatprep.mubr.f32.mxu1 %v1895_v61 }
 0xba6   :  { %1119 = vmatprep.subr.mxu1 %v2027_v42 }
 0xba7   :  { %1120 = vmatpush1.msra.mxu1 %v2033_v44 }
 0xba8   :  { %1121 = vmatprep.subr.mxu1 %v2041_v46 }
 0xba9   :  { %1122 = vmatpush1.msra.mxu1 %v2044_v47 }
 0xbaa   :  { %1123 = vmatprep.subr.mxu1 %v2051_v49 }
 0xbab   :  { %1124 = vmatpush1.msra.mxu1 %v2056_v50 }
 0xbac   :  { %1125 = vmatprep.subr.mxu1 %v2064_v52 }
 0xbad   :  { %1126 = vmatpush1.msra.mxu1 %v2068_v54 }
 0xbae   :  { %1127 = vmatprep.subr.mxu1 %v2073_v55 }
 0xbaf   :  { %1128 = vmatpush1.msra.mxu1 %v2076_v56 }
 0xbb0   :  { %1129 = vmatprep.subr.mxu1 %v2080_v57 }
 0xbb1   :  { %1130 = vmatpush1.msra.mxu1 %v2084_v58 }
 0xbb2   :  { %1131 = vmatprep.subr.mxu1 %v2089_v59 }
 0xbb3   :  { %1132 = vmatpush1.msra.mxu1 %v2092_v60 }
 0xbb4   :  { %1397 = vmatprep.subr.mxu1 %v2021_v40 }
 0xc64   :  { %v887_v35 = vpop.f32.mrf.mxu1 }
 0xc65   :  { %v888_v18 = vadd.f32 %v887_v35, %v1997_v22 }
 0xc66   :  { %v889_v36 = vpop.f32.mrf.mxu1 }
 0xc67   :  { %v892_v20 = vadd.f32 %v888_v18, %v2193_v10  ;;  %v890_v37 = vadd.f32 %v889_v36, %v2144_v25 }
 0xc69   :  { %v893_v38 = vadd.f32 %v892_v20, %v892_v20  ;;  %v921_v39 = vadd.f32 %v890_v37, %v890_v37 }
 0xc6b   :  { %v894_v23 = vsel %vm2002_vm3, %v893_v38, %v892_v20  ;;  %v922_v43 = vsel %vm2002_vm3, %v921_v39, %v890_v37 }
 0xc6c   :  { %v1633_v45 = vmul.f32 -1.442695, %v894_v23  ;;  %v1635_v48 = vmul.f32 -1.442695, %v922_v43 }
 0xc6e   :  { %1791 = vpow2.f32 %v1633_v45 }
 0xc6f   :  { %1793 = vpow2.f32 %v1635_v48 }
 0xc7b   :  { %v1792_v40 = vpop.eup %1791 }
 0xc7c   :  { %v1794_v51 = vpop.eup %1793  ;;  %v898_v53 = vadd.f32 1.0, %v1792_v40 }
 0xc7d   :  { %v926_v19 = vadd.f32 1.0, %v1794_v51 }
 0xc7e   :  { %1795 = vrcp.f32 %v898_v53 }
 0xc7f   :  { %1797 = vrcp.f32 %v926_v19 }
 0xc8b   :  { %v1796_v10 = vpop.eup %1795 }
 0xc8c   :  { %v1798_v62 = vpop.eup %1797  ;;  %v901_v63 = vadd.f32 %v1796_v10, %v1796_v10 }
 0xc8d   :  { %v929_v0 = vadd.f32 %v1798_v62, %v1798_v62 }
 0xc8e   :  { %v1634_v1 = vadd.f32 -1.0, %v901_v63 }
 0xc8f   :  { %v1636_v2 = vadd.f32 -1.0, %v929_v0 }
 0xc90   :  { %v903_v3 = vsel %vm2002_vm3, %v1634_v1, %v1796_v10 }
 0xc91   :  { %v931_v5 = vsel %vm2002_vm3, %v1636_v2, %v1798_v62  ;;  %906 = vrot.lane.b32.xlu0 %v903_v3, %s1892_s5  ;;  %v904_v12 = vmul.f32 %v903_v3, %v2262_v17 }
 0xc92   :  { %934 = vrot.lane.b32.xlu1 %v931_v5, %s1892_s5  ;;  %v932_v14 = vmul.f32 %v931_v5, %v2264_v21 }
 0xd03   :  { %v907_v6 = vpop.permute.xlu0 %906 }
 0xd04   :  { %v935_v7 = vpop.permute.xlu1 %934  ;;  %v909_v9 = vmul.f32 %v907_v6, %v903_v3 }
 0xd05   :  { %v937_v11 = vmul.f32 %v935_v7, %v931_v5 }
 0xd06   :  { %911 = vrot.lane.b32.xlu0 %v909_v9, %s1894_s0 }
 0xd07   :  { %939 = vrot.lane.b32.xlu1 %v937_v11, %s1894_s0 }
 0xd78   :  { %v912_v4 = vpop.permute.xlu0 %911 }
 0xd79   :  { %v940_v16 = vpop.permute.xlu1 %939  ;;  %v2308_v8 = vadd.f32 %v912_v4, %v904_v12 }
 0xd7a   :  { %v2310_v29 = vadd.f32 %v940_v16, %v932_v14 }
 0xd7b   :  { %1799 = vtanh.f32 %v2308_v8 }
 0xd7c   :  { %1801 = vtanh.f32 %v2310_v29 }
 0xd88   :  { %v1800_v30 = vpop.eup %1799 }
 0xd89   :  { %v1802_v13 = vpop.eup %1801  ;;  %917 = vrot.lane.b32.xlu0 %v1800_v30, %s1892_s5 }
 0xd8a   :  { %945 = vrot.lane.b32.xlu1 %v1802_v13, %s1892_s5 }
 0xdfb   :  { %v918_v31 = vpop.permute.xlu0 %917 }
 0xdfc   :  { %v946_v17 = vpop.permute.xlu1 %945  ;;  %v920_v15 = vmul.f32 %v918_v31, %v903_v3 }
 0xdfd   :  { %v948_v21 = vmul.f32 %v946_v17, %v931_v5 }
 0xdfe   :  { %950 = vrot.lane.b32.xlu0 %v920_v15, %s1894_s0 }
 0xdff   :  { %954 = vrot.lane.b32.xlu1 %v948_v21, %s1892_s5 }
 0xe70   :  { %v951_v32 = vpop.permute.xlu0 %950 }
 0xe71   :  { %v955_v33 = vpop.permute.xlu1 %954 }
 0xe72   :  { %v957_v34 = vsel %vm63_vm0, %v951_v32, %v955_v33 }
 0xe73   :  { %1637 = vmatmul.mubr.msk.f32.vlgmr.msra.gmra.mxu0 %vm395_vm4, %v957_v34 }
 0xe74   :  { %1258 = vmatpush1.msra.mxu0 %v2025_v41  ;;  %1305 = vmatprep.mubr.f32.mxu0 %v1895_v61 }
 0xe75   :  { %1259 = vmatprep.subr.mxu0 %v2027_v42 }
 0xe76   :  { %1260 = vmatpush1.msra.mxu0 %v2033_v44 }
 0xe77   :  { %1261 = vmatprep.subr.mxu0 %v2041_v46 }
 0xe78   :  { %1262 = vmatpush1.msra.mxu0 %v2044_v47 }
 0xe79   :  { %1263 = vmatprep.subr.mxu0 %v2051_v49 }
 0xe7a   :  { %1264 = vmatpush1.msra.mxu0 %v2056_v50 }
 0xe7b   :  { %1265 = vmatprep.subr.mxu0 %v2064_v52 }
 0xe7c   :  { %1266 = vmatpush1.msra.mxu0 %v2068_v54 }
 0xe7d   :  { %1267 = vmatprep.subr.mxu0 %v2073_v55 }
 0xe7e   :  { %1268 = vmatpush1.msra.mxu0 %v2076_v56 }
 0xe7f   :  { %1269 = vmatprep.subr.mxu0 %v2080_v57 }
 0xe80   :  { %1270 = vmatpush1.msra.mxu0 %v2084_v58 }
 0xe81   :  { %1271 = vmatprep.subr.mxu0 %v2089_v59 }
 0xe82   :  { %1272 = vmatpush1.msra.mxu0 %v2092_v60 }
 0xe83   :  { %1728 = vmatprep.subr.mxu0 %v1485_v26 }
 0xf33   :  { %v1027_v35 = vpop.f32.mrf.mxu0 }
 0xf34   :  { %v1028_v18 = vadd.f32 %v1027_v35, %v1997_v22 }
 0xf35   :  { %v1029_v36 = vpop.f32.mrf.mxu0 }
 0xf36   :  { %v1032_v20 = vadd.f32 %v2191_v24, %v1028_v18  ;;  %v1030_v37 = vadd.f32 %v1029_v36, %v2144_v25 }
 0xf38   :  { %v1033_v38 = vadd.f32 %v1032_v20, %v1032_v20  ;;  %v1061_v39 = vadd.f32 %v1030_v37, %v1030_v37 }
 0xf3a   :  { %v1034_v23 = vsel %vm2002_vm3, %v1033_v38, %v1032_v20  ;;  %v1062_v43 = vsel %vm2002_vm3, %v1061_v39, %v1030_v37 }
 0xf3b   :  { %v1638_v45 = vmul.f32 -1.442695, %v1034_v23  ;;  %v1640_v48 = vmul.f32 -1.442695, %v1062_v43 }
 0xf3d   :  { %1803 = vpow2.f32 %v1638_v45 }
 0xf3e   :  { %1805 = vpow2.f32 %v1640_v48 }
 0xf4a   :  { %v1804_v40 = vpop.eup %1803 }
 0xf4b   :  { %v1806_v51 = vpop.eup %1805  ;;  %v1038_v53 = vadd.f32 1.0, %v1804_v40 }
 0xf4c   :  { %v1066_v19 = vadd.f32 1.0, %v1806_v51 }
 0xf4d   :  { %1807 = vrcp.f32 %v1038_v53 }
 0xf4e   :  { %1809 = vrcp.f32 %v1066_v19 }
 0xf5a   :  { %v1808_v24 = vpop.eup %1807 }
 0xf5b   :  { %v1810_v10 = vpop.eup %1809  ;;  %v1041_v62 = vadd.f32 %v1808_v24, %v1808_v24 }
 0xf5c   :  { %v1069_v63 = vadd.f32 %v1810_v10, %v1810_v10 }
 0xf5d   :  { %v1639_v0 = vadd.f32 -1.0, %v1041_v62 }
 0xf5e   :  { %v1641_v1 = vadd.f32 -1.0, %v1069_v63 }
 0xf5f   :  { %v1043_v2 = vsel %vm2002_vm3, %v1639_v0, %v1808_v24 }
 0xf60   :  { %v1071_v3 = vsel %vm2002_vm3, %v1641_v1, %v1810_v10  ;;  %1046 = vrot.lane.b32.xlu0 %v1043_v2, %s1892_s5  ;;  %v1044_v11 = vmul.f32 %v1043_v2, %v2308_v8 }
 0xf61   :  { %1074 = vrot.lane.b32.xlu1 %v1071_v3, %s1892_s5  ;;  %v1072_v12 = vmul.f32 %v1071_v3, %v2310_v29 }
 0xfd2   :  { %v1047_v5 = vpop.permute.xlu0 %1046 }
 0xfd3   :  { %v1075_v6 = vpop.permute.xlu1 %1074  ;;  %v1049_v7 = vmul.f32 %v1047_v5, %v1043_v2 }
 0xfd4   :  { %v1077_v9 = vmul.f32 %v1075_v6, %v1071_v3 }
 0xfd5   :  { %1051 = vrot.lane.b32.xlu0 %v1049_v7, %s1894_s0 }
 0xfd6   :  { %1079 = vrot.lane.b32.xlu1 %v1077_v9, %s1894_s0 }
0x1047   :  { %v1052_v14 = vpop.permute.xlu0 %1051 }
0x1048   :  { %v1080_v4 = vpop.permute.xlu1 %1079  ;;  %v2353_v16 = vadd.f32 %v1052_v14, %v1044_v11 }
0x1049   :  { %v2355_v30 = vadd.f32 %v1080_v4, %v1072_v12 }
0x104a   :  { %1811 = vtanh.f32 %v2353_v16 }
0x104b   :  { %1813 = vtanh.f32 %v2355_v30 }
0x1057   :  { %v1812_v13 = vpop.eup %1811 }
0x1058   :  { %v1814_v31 = vpop.eup %1813  ;;  %1057 = vrot.lane.b32.xlu0 %v1812_v13, %s1892_s5 }
0x1059   :  { %1085 = vrot.lane.b32.xlu1 %v1814_v31, %s1892_s5 }
0x10ca   :  { %v1058_v17 = vpop.permute.xlu0 %1057 }
0x10cb   :  { %v1086_v8 = vpop.permute.xlu1 %1085  ;;  %v1060_v15 = vmul.f32 %v1058_v17, %v1043_v2 }
0x10cc   :  { %v1088_v29 = vmul.f32 %v1086_v8, %v1071_v3 }
0x10cd   :  { %1090 = vrot.lane.b32.xlu0 %v1060_v15, %s1894_s0 }
0x10ce   :  { %1094 = vrot.lane.b32.xlu1 %v1088_v29, %s1892_s5 }
0x113f   :  { %v1091_v21 = vpop.permute.xlu0 %1090 }
0x1140   :  { %v1095_v32 = vpop.permute.xlu1 %1094 }
0x1141   :  { %v1097_v33 = vsel %vm63_vm0, %v1091_v21, %v1095_v32 }
0x1142   :  { %1642 = vmatmul.mubr.msk.f32.vlgmr.msra.gmra.mxu1 %vm395_vm4, %v1097_v33 }
0x1143   :  { %1398 = vmatpush1.msra.mxu1 %v2025_v41  ;;  %1445 = vmatprep.mubr.f32.mxu1 %v1895_v61 }
0x1144   :  { %1399 = vmatprep.subr.mxu1 %v2027_v42 }
0x1145   :  { %1400 = vmatpush1.msra.mxu1 %v2033_v44 }
0x1146   :  { %1401 = vmatprep.subr.mxu1 %v2041_v46 }
0x1147   :  { %1402 = vmatpush1.msra.mxu1 %v2044_v47 }
0x1148   :  { %1403 = vmatprep.subr.mxu1 %v2051_v49 }
0x1149   :  { %1404 = vmatpush1.msra.mxu1 %v2056_v50 }
0x114a   :  { %1405 = vmatprep.subr.mxu1 %v2064_v52 }
0x114b   :  { %1406 = vmatpush1.msra.mxu1 %v2068_v54 }
0x114c   :  { %1407 = vmatprep.subr.mxu1 %v2073_v55 }
0x114d   :  { %1408 = vmatpush1.msra.mxu1 %v2076_v56 }
0x114e   :  { %1409 = vmatprep.subr.mxu1 %v2080_v57 }
0x114f   :  { %1410 = vmatpush1.msra.mxu1 %v2084_v58 }
0x1150   :  { %1411 = vmatprep.subr.mxu1 %v2089_v59 }
0x1151   :  { %1412 = vmatpush1.msra.mxu1 %v2092_v60 }
0x1202   :  { %v1167_v41 = vpop.f32.mrf.mxu1 }
0x1203   :  { %v1168_v42 = vadd.f32 %v1167_v41, %v1997_v22 }
0x1204   :  { %v1169_v44 = vpop.f32.mrf.mxu1 }
0x1205   :  { %v1172_v46 = vadd.f32 %v1168_v42, %v2197_v28  ;;  %v1170_v47 = vadd.f32 %v1169_v44, %v2144_v25 }
0x1207   :  { %v1173_v49 = vadd.f32 %v1172_v46, %v1172_v46  ;;  %v1201_v50 = vadd.f32 %v1170_v47, %v1170_v47 }
0x1209   :  { %v1174_v52 = vsel %vm2002_vm3, %v1173_v49, %v1172_v46  ;;  %v1202_v54 = vsel %vm2002_vm3, %v1201_v50, %v1170_v47 }
0x120a   :  { %v1643_v55 = vmul.f32 -1.442695, %v1174_v52  ;;  %v1645_v56 = vmul.f32 -1.442695, %v1202_v54 }
0x120c   :  { %1815 = vpow2.f32 %v1643_v55 }
0x120d   :  { %1817 = vpow2.f32 %v1645_v56 }
0x1219   :  { %v1816_v57 = vpop.eup %1815 }
0x121a   :  { %v1818_v58 = vpop.eup %1817  ;;  %v1178_v59 = vadd.f32 1.0, %v1816_v57 }
0x121b   :  { %v1206_v60 = vadd.f32 1.0, %v1818_v58 }
0x121c   :  { %1819 = vrcp.f32 %v1178_v59 }
0x121d   :  { %1821 = vrcp.f32 %v1206_v60 }
0x1229   :  { %v1820_v61 = vpop.eup %1819 }
0x122a   :  { %v1822_v28 = vpop.eup %1821  ;;  %v1181_v34 = vadd.f32 %v1820_v61, %v1820_v61 }
0x122b   :  { %v1209_v35 = vadd.f32 %v1822_v28, %v1822_v28 }
0x122c   :  { %v1644_v18 = vadd.f32 -1.0, %v1181_v34 }
0x122d   :  { %v1646_v36 = vadd.f32 -1.0, %v1209_v35 }
0x122e   :  { %v1183_v20 = vsel %vm2002_vm3, %v1644_v18, %v1820_v61 }
0x122f   :  { %v1211_v37 = vsel %vm2002_vm3, %v1646_v36, %v1822_v28  ;;  %1186 = vrot.lane.b32.xlu0 %v1183_v20, %s1892_s5  ;;  %v1184_v45 = vmul.f32 %v1183_v20, %v2353_v16 }
0x1230   :  { %1214 = vrot.lane.b32.xlu1 %v1211_v37, %s1892_s5  ;;  %v1212_v48 = vmul.f32 %v1211_v37, %v2355_v30 }
0x12a1   :  { %v1187_v38 = vpop.permute.xlu0 %1186 }
0x12a2   :  { %v1215_v39 = vpop.permute.xlu1 %1214  ;;  %v1189_v23 = vmul.f32 %v1187_v38, %v1183_v20 }
0x12a3   :  { %v1217_v43 = vmul.f32 %v1215_v39, %v1211_v37 }
0x12a4   :  { %1191 = vrot.lane.b32.xlu0 %v1189_v23, %s1894_s0 }
0x12a5   :  { %1219 = vrot.lane.b32.xlu1 %v1217_v43, %s1894_s0 }
0x1316   :  { %v1192_v40 = vpop.permute.xlu0 %1191 }
0x1317   :  { %v1220_v51 = vpop.permute.xlu1 %1219  ;;  %v1194_v53 = vadd.f32 %v1192_v40, %v1184_v45 }
0x1318   :  { %v1222_v19 = vadd.f32 %v1220_v51, %v1212_v48 }
0x1319   :  { %1823 = vtanh.f32 %v1194_v53 }
0x131a   :  { %1825 = vtanh.f32 %v1222_v19 }
0x1326   :  { %v1824_v24 = vpop.eup %1823 }
0x1327   :  { %v1826_v10 = vpop.eup %1825  ;;  %1197 = vrot.lane.b32.xlu0 %v1824_v24, %s1892_s5 }
0x1328   :  { %1225 = vrot.lane.b32.xlu1 %v1826_v10, %s1892_s5 }
0x1399   :  { %v1198_v62 = vpop.permute.xlu0 %1197 }
0x139a   :  { %v1226_v63 = vpop.permute.xlu1 %1225  ;;  %v1200_v0 = vmul.f32 %v1198_v62, %v1183_v20 }
0x139b   :  { %v1228_v1 = vmul.f32 %v1226_v63, %v1211_v37 }
0x139c   :  { %1230 = vrot.lane.b32.xlu0 %v1200_v0, %s1894_s0 }
0x139d   :  { %1234 = vrot.lane.b32.xlu1 %v1228_v1, %s1892_s5 }
0x140e   :  { %v1231_v2 = vpop.permute.xlu0 %1230 }
0x140f   :  { %v1235_v3 = vpop.permute.xlu1 %1234 }
0x1410   :  { %v1237_v5 = vsel %vm63_vm0, %v1231_v2, %v1235_v3  ;;  %v1484_v2 = vld [vmem:[%s2464_s6 + $0x10] sm:$0xff]  ;;  %v1483_v3 = vld [vmem:[%s2464_s6 + $0x8] sm:$0xff] }
0x1411   :  { %1647 = vmatmul.mubr.msk.f32.vlgmr.msra.gmra.mxu0 %vm395_vm4, %v1237_v5  ;;  %v1482_v5 = vld [vmem:[%s2464_s6] sm:$0xff]  ;;  %s1896_s6 = smov [#allocation5]  }
0x1412   :  { %1729 = vmatpush3.msra.mxu0 %v1485_v26  ;;  %s1586_s9 = sshll.u32 %s1896_s6, 4  ;;  %s1587_s9 = int_to_ptr.vmem [resolvable:$true] %s1586_s9 }
0x1413   :  { %1730 = vmatprep.subr.mxu0 %v1484_v2  ;;  %s1865_s3 = scalar_lea.vmem %s1587_s9, 256  ;;  %p1870_p6 = scmp.lt.s32.totalorder %s1587_s9, %s1587_s9 }
0x1414   :  { %1731 = vmatpush3.msra.mxu0 %v1484_v2  ;;  %p1866_p5 = scmp.ne.s32.totalorder %s1587_s9, %s1865_s3  ;;  %p1871_p7 = scmp.lt.s32.totalorder %s1865_s3, %s1865_s3 }
0x1415   :  { %1732 = vmatprep.subr.mxu0 %v1483_v3 }
0x1416   :  { %1733 = vmatpush3.msra.mxu0 %v1483_v3  ;;  %p1872_p8 = por %p1871_p7, %p1870_p6 }
0x1417   :  { %1734 = vmatprep.subr.mxu0 %v1482_v5 }
0x1418   :  { %1735 = vmatpush3.msra.mxu0 %v1482_v5  ;;  %p1873_p9 = pnand %p1872_p8, %p1866_p5 }
0x14d1   :  { %v1307_v6 = vpop.f32.mrf.mxu0 }
0x14d2   :  { %v1308_v7 = vadd.f32 %v1307_v6, %v1997_v22 }
0x14d3   :  { %v1309_v9 = vpop.f32.mrf.mxu0 }
0x14d4   :  { %v1312_v11 = vadd.f32 %v2195_v27, %v1308_v7  ;;  %v1310_v12 = vadd.f32 %v1309_v9, %v2144_v25 }
0x14d6   :  { %v1313_v14 = vadd.f32 %v1312_v11, %v1312_v11  ;;  %v1341_v4 = vadd.f32 %v1310_v12, %v1310_v12 }
0x14d8   :  { %v1314_v16 = vsel %vm2002_vm3, %v1313_v14, %v1312_v11  ;;  %v1342_v30 = vsel %vm2002_vm3, %v1341_v4, %v1310_v12  ;;  %v1655_v14 = vld [vmem:[%s2465_s7] ss:$0 sm:$0xff] }
0x14d9   :  { %v1648_v13 = vmul.f32 -1.442695, %v1314_v16  ;;  %v1650_v31 = vmul.f32 -1.442695, %v1342_v30 }
0x14db   :  { %1827 = vpow2.f32 %v1648_v13 }
0x14dc   :  { %1829 = vpow2.f32 %v1650_v31 }
0x14e8   :  { %v1828_v17 = vpop.eup %1827 }
0x14e9   :  { %v1830_v8 = vpop.eup %1829  ;;  %v1318_v22 = vadd.f32 1.0, %v1828_v17 }
0x14ea   :  { %v1346_v15 = vadd.f32 1.0, %v1830_v8 }
0x14eb   :  { %1831 = vrcp.f32 %v1318_v22 }
0x14ec   :  { %1833 = vrcp.f32 %v1346_v15 }
0x14f8   :  { %v1832_v27 = vpop.eup %1831 }
0x14f9   :  { %v1834_v29 = vpop.eup %1833  ;;  %v1321_v21 = vadd.f32 %v1832_v27, %v1832_v27 }
0x14fa   :  { %v1349_v32 = vadd.f32 %v1834_v29, %v1834_v29 }
0x14fb   :  { %v1649_v33 = vadd.f32 -1.0, %v1321_v21 }
0x14fc   :  { %v1651_v41 = vadd.f32 -1.0, %v1349_v32 }
0x14fd   :  { %v1323_v42 = vsel %vm2002_vm3, %v1649_v33, %v1832_v27 }
0x14fe   :  { %v1351_v44 = vsel %vm2002_vm3, %v1651_v41, %v1834_v29  ;;  %1326 = vrot.lane.b32.xlu0 %v1323_v42, %s1892_s5  ;;  %v1324_v52 = vmul.f32 %v1323_v42, %v1194_v53 }
0x14ff   :  { %1354 = vrot.lane.b32.xlu1 %v1351_v44, %s1892_s5  ;;  %v1352_v54 = vmul.f32 %v1351_v44, %v1222_v19 }
0x1570   :  { %v1327_v46 = vpop.permute.xlu0 %1326 }
0x1571   :  { %v1355_v47 = vpop.permute.xlu1 %1354  ;;  %v1329_v49 = vmul.f32 %v1327_v46, %v1323_v42 }
0x1572   :  { %v1357_v50 = vmul.f32 %v1355_v47, %v1351_v44 }
0x1573   :  { %1331 = vrot.lane.b32.xlu0 %v1329_v49, %s1894_s0 }
0x1574   :  { %1359 = vrot.lane.b32.xlu1 %v1357_v50, %s1894_s0 }
0x15e5   :  { %v1332_v55 = vpop.permute.xlu0 %1331 }
0x15e6   :  { %v1360_v56 = vpop.permute.xlu1 %1359  ;;  %v1334_v57 = vadd.f32 %v1332_v55, %v1324_v52 }
0x15e7   :  { %v1362_v58 = vadd.f32 %v1360_v56, %v1352_v54 }
0x15e8   :  { %1835 = vtanh.f32 %v1334_v57 }
0x15e9   :  { %1837 = vtanh.f32 %v1362_v58 }
0x15f5   :  { %v1836_v59 = vpop.eup %1835 }
0x15f6   :  { %v1838_v60 = vpop.eup %1837  ;;  %1337 = vrot.lane.b32.xlu0 %v1836_v59, %s1892_s5 }
0x15f7   :  { %1365 = vrot.lane.b32.xlu1 %v1838_v60, %s1892_s5 }
0x1668   :  { %v1338_v61 = vpop.permute.xlu0 %1337 }
0x1669   :  { %v1366_v28 = vpop.permute.xlu1 %1365  ;;  %v1340_v34 = vmul.f32 %v1338_v61, %v1323_v42 }
0x166a   :  { %v1368_v35 = vmul.f32 %v1366_v28, %v1351_v44 }
0x166b   :  { %1370 = vrot.lane.b32.xlu0 %v1340_v34, %s1894_s0 }
0x166c   :  { %1374 = vrot.lane.b32.xlu1 %v1368_v35, %s1892_s5 }
0x16dd   :  { %v1371_v18 = vpop.permute.xlu0 %1370 }
0x16de   :  { %v1375_v36 = vpop.permute.xlu1 %1374 }
0x16df   :  { %v1377_v20 = vsel %vm63_vm0, %v1371_v18, %v1375_v36 }
0x16e0   :  { %1652 = vmatmul.mubr.msk.f32.vlgmr.msra.gmra.mxu1 %vm395_vm4, %v1377_v20 }
0x17a0   :  { %v1447_v37 = vpop.f32.mrf.mxu1 }
0x17a2   :  { %v1448_v38 = vpop.f32.mrf.mxu1 }
0x17a3   :  { %v1449_v39 = vadd.f32 %v1448_v38, %v2144_v25 }
0x17a5   :  { %v1451_v23 = vadd.f32 %v1449_v39, %v1449_v39 }
0x17a7   :  { %v1452_v43 = vsel %vm2002_vm3, %v1451_v23, %v1449_v39 }
0x17a8   :  { %v1653_v45 = vmul.f32 -1.442695, %v1452_v43 }
0x17aa   :  { %1839 = vpow2.f32 %v1653_v45 }
0x17b7   :  { %v1840_v48 = vpop.eup %1839 }
0x17b8   :  { %v1456_v40 = vadd.f32 1.0, %v1840_v48 }
0x17ba   :  { %1841 = vrcp.f32 %v1456_v40 }
0x17c7   :  { %v1842_v51 = vpop.eup %1841 }
0x17c8   :  { %v1459_v53 = vadd.f32 %v1842_v51, %v1842_v51 }
0x17ca   :  { %v1654_v19 = vadd.f32 -1.0, %v1459_v53 }
0x17cc   :  { %v1461_v24 = vsel %vm2002_vm3, %v1654_v19, %v1842_v51 }
0x17cd   :  { %1464 = vrot.lane.b32.xlu0 %v1461_v24, %s1892_s5  ;;  %v1462_v25 = vmul.f32 %v1461_v24, %v1362_v58 }
0x183f   :  { %v1465_v10 = vpop.permute.xlu0 %1464 }
0x1840   :  { %v1467_v62 = vmul.f32 %v1465_v10, %v1461_v24 }
0x1842   :  { %1469 = vrot.lane.b32.xlu1 %v1467_v62, %s1894_s0 }
0x18b4   :  { %v1470_v63 = vpop.permute.xlu1 %1469 }
0x18b5   :  { %v1472_v0 = vadd.f32 %v1470_v63, %v1462_v25 }
0x18b7   :  { %1843 = vtanh.f32 %v1472_v0  ;;  %1480 = vrot.lane.b32.xlu1 %v1472_v0, %s1892_s5 }
0x18c4   :  { %v1844_v1 = vpop.eup %1843 }
0x18c5   :  { %1475 = vrot.lane.b32.xlu0 %v1844_v1, %s1892_s5 }
0x1929   :  { %v1481_v6 = vpop.permute.xlu1 %1480 }
0x192a   :  { %1496 = vrot.lane.b32.xlu1 %v1481_v6, %s1894_s0 }
0x1937   :  { %v1476_v7 = vpop.permute.xlu0 %1475 }
0x1938   :  { %v1478_v9 = vmul.f32 %v1476_v7, %v1461_v24 }
0x193a   :  { %1494 = vrot.lane.b32.xlu0 %v1478_v9, %s1894_s0 }
0x199c   :  { %v1497_v12 = vpop.permute.xlu1 %1496 }
0x19ac   :  { %v1495_v11 = vpop.permute.xlu0 %1494 }
0x19ad   :  { %1736 = vmatprep.mubr.msk.f32.mxu0 %vm63_vm0, %v1495_v11 }
0x19ae   :  { %1737 = vmatmul.mubr.msk.f32.vlgmr.msra.gmra.mxu0 %vm63_vm0, %v1497_v12 }
0x1a6e   :  { %v1738_v4 = vpop.f32.mrf.mxu0 }
0x1a6f   :  { %v1574_v16 = vadd.f32 %v1738_v4, %v1655_v14 }
0x1a70   :  { %v1568_v30 = vpop.f32.mrf.mxu0 }
0x1a71   :  { %v1578_v13 = vmax.f32 %v1574_v16, 0.0  ;;  %v1569_v31 = vadd.f32 %v1655_v14, %v1568_v30 }
0x1a73   :  { %1580 = vst.msk [vmem:[#allocation5 + $0x8] sm:$0xff] %vm63_vm0, %v1578_v13  ;;  %v1577_v17 = vmax.f32 %v1569_v31, 0.0 }
0x1a75   :  { %1579 = vst.msk [vmem:[#allocation5] sm:$0xff] %vm63_vm0, %v1577_v17 }
0x1a76   :  { %1876 = shalt.err (!%p1873_p9)
}
0x1a77   :  { %s1897_s7 = smov 128   ;;  %s1898_s2 = smov 8  }
0x1a78   :  { %1592 = dma.vmem_to_hbm [thread:$0]  %s1587_s9, 256, %s2466_s8, [#allocation4], %s1897_s7, %s1897_s7, %s1898_s2  }
0x1a79   :  { %1887 = dma.done.wait [#allocation4], 256  }
0x1a7a   :  { %1888 = vsyncadd [#allocation4], 4294967040 }
0x1a7b   :  { %1596 = vsyncpa [#allocation3], 1 }
0x1a7c   :  { %1597 = vsyncpa [#allocation4], 1 }

</bundles_post_ra>
